<compile_context>
chip_gen: v7x
topology: tpu7x:2x2x1
jax: 0.10.0
libtpu: 0.0.40
codegen_flags: <defaults>
</compile_context>

<pallas_src>
import functools

import jax
import jax.numpy as jnp
import numpy as np
from jax.experimental import pallas as pl
from jax.experimental.pallas import tpu as pltpu


# --------------------------------------------------------------------------- #
# Pallas kernel (one image per grid step, channel-major layout)
# --------------------------------------------------------------------------- #
def _armor_attention_kernel(x_ref, w1_ref, b1_ref, w2_ref, b2_ref,
                            wsp_ref, bsp_ref, wadj_ref, badj_ref,
                            o_ref, pad_max_ref, pad_avg_ref, *, width):
    # x_ref block: (1, C1, H*W)  -- bf16, H*W on lanes.
    _, C1, HW = x_ref.shape
    _, C2, _ = o_ref.shape
    K = 7
    P = (K - 1) // 2                        # 3
    W = width
    L = pad_max_ref.shape[1]                # (H + 2P) * W + 2P
    base = P * W + P                        # interior start inside the padded map

    x = x_ref[0]                                             # (C1, HW) bf16

    # ---- channel attention: GAP -> 1x1(+BN,SiLU) -> 1x1(+BN) -> sigmoid ---- #
    # GAP and the tiny MLP run on the MXU with f32 accumulation (the "vector"
    # side is widened to 8 identical columns so no matmul minor dim is 1).
    ones_hw8 = jnp.ones((HW, 8), dtype=x.dtype)
    pooled8 = jax.lax.dot_general(x, ones_hw8, (((1,), (0,)), ((), ())),
                                  preferred_element_type=jnp.float32) * (1.0 / HW)
    h8 = jax.lax.dot_general(w1_ref[...], pooled8, (((1,), (0,)), ((), ())),
                             preferred_element_type=jnp.float32) + b1_ref[...]
    h8 = h8 * jax.nn.sigmoid(h8)                              # SiLU, (HID, 8)
    cw8 = jax.lax.dot_general(w2_ref[...], h8, (((1,), (0,)), ((), ())),
                              preferred_element_type=jnp.float32) + b2_ref[...]
    cw = jax.nn.sigmoid(cw8[:, 0:1])                          # (C1, 1) f32
    cw_bf = cw.astype(x.dtype)

    x_ca = x * cw_bf                                          # (C1, HW) bf16

    # ---- spatial attention input maps: max / mean over channels ---- #
    max_flat = jnp.max(x_ca, axis=0, keepdims=True).astype(jnp.float32)   # (1, HW)
    ones_8c = jnp.ones((8, C1), dtype=x.dtype)
    sum_flat8 = jax.lax.dot_general(ones_8c, x_ca, (((1,), (0,)), ((), ())),
                                    preferred_element_type=jnp.float32)   # (8, HW)
    avg_flat = sum_flat8[0:1, :] * (1.0 / C1)                              # (1, HW)

    # Row-padded flattened maps in scratch: [P*W+P zeros | map | P*W+P zeros].
    # Only the halo is (re)zeroed; the interior is fully overwritten each step.
    # (Zeroing once under pl.when(program_id == 0) would be wrong with the
    # "parallel" batch axis: each TensorCore has its own scratch and only one
    # of them ever sees program_id == 0.)
    zero_halo = jnp.zeros((1, base), jnp.float32)
    pad_max_ref[:, 0:base] = zero_halo
    pad_max_ref[:, base + HW:L] = zero_halo
    pad_max_ref[:, base:base + HW] = max_flat
    pad_avg_ref[:, 0:base] = zero_halo
    pad_avg_ref[:, base + HW:L] = zero_halo
    pad_avg_ref[:, base:base + HW] = avg_flat

    # ---- 7x7 "same" conv, entirely in flattened lane space ---- #
    # out[p] = sum_{m,ki,kj} w[m,ki,kj] * pad_m[p + ki*W + kj], with a per-kj
    # column mask killing taps that would wrap across a row boundary (the zero
    # halo already handles out-of-range rows).
    # TODO(synk): on v6e/v7x move this phase onto the MXU as a banded matmul
    # (precomputed (W+2P, W) band weights per tap-row) if it becomes the
    # binding VPU slot; today it is ~2*49 scalar*vector FMAs over (1, HW).
    col = jax.lax.broadcasted_iota(jnp.int32, (1, HW), 1) % W
    acc = jnp.zeros((1, HW), jnp.float32)
    for kj in range(K):                                       # 7 independent partials
        part = jnp.zeros((1, HW), jnp.float32)
        for ki in range(K):
            s = ki * W + kj
            part = part + (wsp_ref[0 * K * K + ki * K + kj] * pad_max_ref[:, s:s + HW]
                           + wsp_ref[1 * K * K + ki * K + kj] * pad_avg_ref[:, s:s + HW])
        valid = (col >= (P - kj)) & (col <= (W - 1 + P - kj))
        acc = acc + jnp.where(valid, part, 0.0)
    sw = jax.nn.sigmoid(acc + bsp_ref[0])                     # (1, HW) f32

    # ---- residual + channel_adjust (1x1 conv + BN + SiLU) on the MXU ---- #
    y = x_ca * sw.astype(x.dtype) + x                         # (C1, HW) bf16
    z = jax.lax.dot_general(wadj_ref[...], y, (((1,), (0,)), ((), ())),
                            preferred_element_type=jnp.float32)   # (C2, HW) f32
    z = z + badj_ref[...]
    z = z * jax.nn.sigmoid(z)                                 # SiLU
    o_ref[0] = z.astype(o_ref.dtype)                          # lane-dense (C2, HW)


# --------------------------------------------------------------------------- #
# Wrapper
# --------------------------------------------------------------------------- #
def armor_attention(x_nchw, params):
    """ArmorAttention forward.  x_nchw: (B, C1, H, W); returns (B, C2, H, W) f32."""
    B, C1, H, W = x_nchw.shape
    HID = params['w1'].shape[0]
    C2 = params['wadj'].shape[0]
    HW = H * W
    K = 7
    P = (K - 1) // 2
    L = HW + 2 * (P * W + P)

    # bf16 activation path (halves HBM traffic and the per-image VMEM block).
    # The NCHW -> (B, C1, H*W) reshape only collapses contiguous minor dims:
    # free, no transpose, no extra HBM pass.  In production the upstream layer
    # should already emit bf16 so this astype is a no-op.
    x_flat = x_nchw.reshape(B, C1, HW).astype(jnp.bfloat16)

    w1 = params['w1'].astype(jnp.float32)                     # (HID, C1)
    b1 = params['b1'].reshape(HID, 1).astype(jnp.float32)
    w2 = params['w2'].astype(jnp.float32)                     # (C1, HID)
    b2 = params['b2'].reshape(C1, 1).astype(jnp.float32)
    wsp = params['wsp'].reshape(-1).astype(jnp.float32)       # (2*7*7,) SMEM scalars
    bsp = params['bsp'].reshape(-1).astype(jnp.float32)       # (1,)
    wadj = params['wadj'].astype(jnp.bfloat16)                # (C2, C1) bf16 MXU operand
    badj = params['badj'].reshape(C2, 1).astype(jnp.float32)

    # VMEM budget: double-buffered in/out blocks + weights, plus padded-map
    # scratch and the live in-kernel values; ceiling from the actual chip.
    x_block = C1 * HW * 2
    o_block = C2 * HW * 4          # TODO(synk): emit bf16 when downstream allows
    weight_bytes = (HID * C1 + HID + C1 * HID + C1 + C2) * 4 + C2 * C1 * 2
    scratch_bytes = 2 * 8 * (pl.cdiv(L, 128) * 128) * 4
    live_bytes = 2 * C1 * HW * 2 + C2 * HW * 4 + 8 * HW * 4
    vmem_needed = 2 * (x_block + o_block + weight_bytes) + scratch_bytes + live_bytes
    try:
        vmem_cap = pltpu.get_tpu_info().vmem_capacity_bytes
    except Exception:                                          # defensive fallback
        vmem_cap = 64 * 1024 * 1024
    vmem_limit = max(4 * 1024 * 1024, min(int(vmem_needed), int(0.875 * vmem_cap)))

    # TODO(synk): at production sizes (H=W>=160, C1=C2>=256) the per-image
    # blocks overflow v7x's 64 MiB VMEM and small B leaves the BlockSpec
    # pipeline with too few steps: split into (a) a tiny GAP+MLP pre-pass that
    # produces the per-image channel weights and (b) a main kernel with an
    # extra H row-band grid axis (3-row halo via manual DMA), per the review.
    # TODO(synk): c1 == c2 makes channel_adjust an Identity in the PyTorch
    # module; this wrapper always applies the fused Conv path (c1 != c2 here).

    kernel = functools.partial(_armor_attention_kernel, width=W)

    out_flat = pl.pallas_call(
        kernel,
        out_shape=jax.ShapeDtypeStruct((B, C2, HW), jnp.float32),
        grid=(B,),
        in_specs=[
            pl.BlockSpec((1, C1, HW), lambda b: (b, 0, 0)),      # x (channel-major)
            pl.BlockSpec((HID, C1), lambda b: (0, 0)),           # w1
            pl.BlockSpec((HID, 1), lambda b: (0, 0)),            # b1
            pl.BlockSpec((C1, HID), lambda b: (0, 0)),           # w2
            pl.BlockSpec((C1, 1), lambda b: (0, 0)),             # b2
            pl.BlockSpec(memory_space=pltpu.MemorySpace.SMEM),   # 7x7 conv weights
            pl.BlockSpec(memory_space=pltpu.MemorySpace.SMEM),   # 7x7 conv bias
            pl.BlockSpec((C2, C1), lambda b: (0, 0)),            # w_adj (bf16)
            pl.BlockSpec((C2, 1), lambda b: (0, 0)),             # b_adj
        ],
        out_specs=pl.BlockSpec((1, C2, HW), lambda b: (b, 0, 0)),
        scratch_shapes=[
            pltpu.VMEM((1, L), jnp.float32),                     # padded max map (flat)
            pltpu.VMEM((1, L), jnp.float32),                     # padded avg map (flat)
        ],
        compiler_params=pltpu.CompilerParams(
            dimension_semantics=("parallel",),                   # images independent
            vmem_limit_bytes=vmem_limit,
        ),
    )(x_flat, w1, b1, w2, b2, wsp, bsp, wadj, badj)

    # (B, C2, H*W) -> (B, C2, H, W): contiguous reshape, no transpose needed.
    return out_flat.reshape(B, C2, H, W)


# --------------------------------------------------------------------------- #
# Deterministic parameter init (Conv2d weights + folded BatchNorm)
# --------------------------------------------------------------------------- #
def init_params(key, c1, c2, reduction=16, ksize=7, eps=1e-3):
    hidden = max(c1 // reduction, 16)
    keys = jax.random.split(key, 8)

    def bn_params(k, c):
        k1, k2, k3, k4 = jax.random.split(k, 4)
        gamma = 1.0 + 0.1 * jax.random.normal(k1, (c,), jnp.float32)
        beta = 0.1 * jax.random.normal(k2, (c,), jnp.float32)
        mean = 0.1 * jax.random.normal(k3, (c,), jnp.float32)
        var = 1.0 + 0.1 * jax.random.uniform(k4, (c,), jnp.float32)
        return gamma, beta, mean, var

    def fold(w, bn):
        gamma, beta, mean, var = bn
        scale = gamma / jnp.sqrt(var + eps)
        w_f = w * scale.reshape((-1,) + (1,) * (w.ndim - 1))
        b_f = beta - mean * scale
        return w_f, b_f

    w1, b1 = fold(0.3 * jax.random.normal(keys[0], (hidden, c1, 1, 1), jnp.float32),
                  bn_params(keys[1], hidden))
    w2, b2 = fold(0.3 * jax.random.normal(keys[2], (c1, hidden, 1, 1), jnp.float32),
                  bn_params(keys[3], c1))
    wsp, bsp = fold(0.3 * jax.random.normal(keys[4], (1, 2, ksize, ksize), jnp.float32),
                    bn_params(keys[5], 1))
    wadj, badj = fold(0.3 * jax.random.normal(keys[6], (c2, c1, 1, 1), jnp.float32),
                      bn_params(keys[7], c2))

    return {
        'w1': w1.reshape(hidden, c1), 'b1': b1,          # channel_att conv1 (+BN folded)
        'w2': w2.reshape(c1, hidden), 'b2': b2,          # channel_att conv2 (+BN folded)
        'wsp': wsp, 'bsp': bsp,                          # spatial_att 7x7 conv (+BN folded)
        'wadj': wadj.reshape(c2, c1), 'badj': badj,      # channel_adjust 1x1 conv (+BN folded)
    }


# --------------------------------------------------------------------------- #
# Pure-JAX reference (for correctness check)
# --------------------------------------------------------------------------- #
def armor_attention_reference(x, params):
    w1, b1 = params['w1'], params['b1']
    w2, b2 = params['w2'], params['b2']
    wsp, bsp = params['wsp'], params['bsp']
    wadj, badj = params['wadj'], params['badj']
    hi = jax.lax.Precision.HIGHEST

    pooled = jnp.mean(x, axis=(2, 3))                                   # (B, C1)
    h = jnp.einsum('bc,hc->bh', pooled, w1, precision=hi) + b1
    h = h * jax.nn.sigmoid(h)
    cw = jnp.einsum('bh,ch->bc', h, w2, precision=hi) + b2
    cw = jax.nn.sigmoid(cw)
    x_ca = x * cw[:, :, None, None]

    max_out = jnp.max(x_ca, axis=1, keepdims=True)
    avg_out = jnp.mean(x_ca, axis=1, keepdims=True)
    sp = jnp.concatenate([max_out, avg_out], axis=1)
    s = jax.lax.conv_general_dilated(sp, wsp, (1, 1), ((3, 3), (3, 3)),
                                     dimension_numbers=('NCHW', 'OIHW', 'NCHW'),
                                     precision=hi) + bsp.reshape(1, 1, 1, 1)
    sw = jax.nn.sigmoid(s)

    y = x_ca * sw + x
    z = jnp.einsum('bchw,oc->bohw', y, wadj, precision=hi) + badj.reshape(1, -1, 1, 1)
    return z * jax.nn.sigmoid(z)


# --------------------------------------------------------------------------- #
if __name__ == "__main__":
    B, C1, H, W = 2, 4, 16, 16
    C2 = 8   # c1 != c2 exercises the channel_adjust Conv path (c1 == c2 would be Identity)

    key = jax.random.PRNGKey(0)
    kx, kp = jax.random.split(key)
    x = jax.random.normal(kx, (B, C1, H, W), jnp.float32)
    params = init_params(kp, C1, C2)

    out = armor_attention(x, params)
    out = jax.block_until_ready(out)

    # The kernel consumes bf16 activations, so compare against the f32
    # reference evaluated on the same bf16-rounded input; the tolerance covers
    # the in-kernel bf16 intermediates and MXU rounding.
    x_bf = x.astype(jnp.bfloat16).astype(jnp.float32)
    ref = armor_attention_reference(x_bf, params)
    np.testing.assert_allclose(np.asarray(out), np.asarray(ref), rtol=2e-2, atol=2e-2)

    print("KERNEL_OK")
</pallas_src>

<mosaic_0001>
module attributes {stable_mosaic.version = 11 : i64} {
  func.func @_armor_attention_kernel(%arg0: i32, %arg1: memref<1x4x256xbf16, #tpu.memory_space<vmem>>, %arg2: memref<16x4xf32, #tpu.memory_space<vmem>>, %arg3: memref<16x1xf32, #tpu.memory_space<vmem>>, %arg4: memref<4x16xf32, #tpu.memory_space<vmem>>, %arg5: memref<4x1xf32, #tpu.memory_space<vmem>>, %arg6: memref<98xf32, #tpu.memory_space<smem>>, %arg7: memref<1xf32, #tpu.memory_space<smem>>, %arg8: memref<8x4xbf16, #tpu.memory_space<vmem>>, %arg9: memref<8x1xf32, #tpu.memory_space<vmem>>, %arg10: memref<1x8x256xf32, #tpu.memory_space<vmem>>, %arg11: memref<1x358xf32, #tpu.memory_space<vmem>>, %arg12: memref<1x358xf32, #tpu.memory_space<vmem>>) attributes {dimension_semantics = [#tpu.dimension_semantics<parallel>], iteration_bounds = array<i64: 2>, scalar_prefetch = 0 : i64, scratch_operands = 2 : i64, tpu.core_type = #tpu.core_type<tc>, window_params = [{transform_indices = @transform_0, window_bounds = array<i64: 1, 4, 256>}, {pipeline_mode = #tpu.pipeline_mode<synchronous>, transform_indices = @transform_1, window_bounds = array<i64: 16, 4>}, {pipeline_mode = #tpu.pipeline_mode<synchronous>, transform_indices = @transform_2, window_bounds = array<i64: 16, 1>}, {pipeline_mode = #tpu.pipeline_mode<synchronous>, transform_indices = @transform_3, window_bounds = array<i64: 4, 16>}, {pipeline_mode = #tpu.pipeline_mode<synchronous>, transform_indices = @transform_4, window_bounds = array<i64: 4, 1>}, {transform_indices = @transform_5, window_bounds = array<i64: 98>}, {transform_indices = @transform_6, window_bounds = array<i64: 1>}, {pipeline_mode = #tpu.pipeline_mode<synchronous>, transform_indices = @transform_7, window_bounds = array<i64: 8, 4>}, {pipeline_mode = #tpu.pipeline_mode<synchronous>, transform_indices = @transform_8, window_bounds = array<i64: 8, 1>}, {transform_indices = @transform_9, window_bounds = array<i64: 1, 8, 256>}]} {
    %c0 = arith.constant 0 : index
    %c0_0 = arith.constant 0 : index
    %c0_1 = arith.constant 0 : index
    %0 = vector.load %arg1[%c0, %c0_0, %c0_1] : memref<1x4x256xbf16, #tpu.memory_space<vmem>>, vector<1x4x256xbf16>
    %1 = vector.shape_cast %0 : vector<1x4x256xbf16> to vector<4x256xbf16>
    %cst = arith.constant 1.000000e+00 : bf16
    %2 = vector.broadcast %cst : bf16 to vector<256x8xbf16>
    %cst_2 = arith.constant dense<0.000000e+00> : vector<4x8xf32>
    %3 = tpu.matmul %1, %2, %cst_2 {dimension_numbers = #tpu.dot_dimension_numbers<[1], [0], [0], [1], [0, 0, 1, 1], [], []>} : vector<4x256xbf16>, vector<256x8xbf16>, vector<4x8xf32> -> vector<4x8xf32>
    %cst_3 = arith.constant 3.906250e-03 : f32
    %4 = vector.broadcast %cst_3 : f32 to vector<4x8xf32>
    %5 = arith.mulf %3, %4 : vector<4x8xf32>
    %c0_4 = arith.constant 0 : index
    %c0_5 = arith.constant 0 : index
    %6 = vector.load %arg2[%c0_4, %c0_5] : memref<16x4xf32, #tpu.memory_space<vmem>>, vector<16x4xf32>
    %cst_6 = arith.constant dense<0.000000e+00> : vector<16x8xf32>
    %7 = tpu.matmul %6, %5, %cst_6 {dimension_numbers = #tpu.dot_dimension_numbers<[1], [0], [0], [1], [0, 0, 1, 1], [], []>} : vector<16x4xf32>, vector<4x8xf32>, vector<16x8xf32> -> vector<16x8xf32>
    %c0_7 = arith.constant 0 : index
    %c0_8 = arith.constant 0 : index
    %8 = vector.load %arg3[%c0_7, %c0_8] : memref<16x1xf32, #tpu.memory_space<vmem>>, vector<16x1xf32>
    %9 = vector.broadcast %8 : vector<16x1xf32> to vector<16x8xf32>
    %10 = arith.addf %7, %9 : vector<16x8xf32>
    %11 = arith.negf %10 : vector<16x8xf32>
    %12 = math.exp %11 : vector<16x8xf32>
    %cst_9 = arith.constant 1.000000e+00 : f32
    %13 = vector.broadcast %cst_9 : f32 to vector<16x8xf32>
    %14 = arith.addf %13, %12 : vector<16x8xf32>
    %15 = arith.divf %13, %14 : vector<16x8xf32>
    %16 = arith.mulf %10, %15 : vector<16x8xf32>
    %c0_10 = arith.constant 0 : index
    %c0_11 = arith.constant 0 : index
    %17 = vector.load %arg4[%c0_10, %c0_11] : memref<4x16xf32, #tpu.memory_space<vmem>>, vector<4x16xf32>
    %cst_12 = arith.constant dense<0.000000e+00> : vector<4x8xf32>
    %18 = tpu.matmul %17, %16, %cst_12 {dimension_numbers = #tpu.dot_dimension_numbers<[1], [0], [0], [1], [0, 0, 1, 1], [], []>} : vector<4x16xf32>, vector<16x8xf32>, vector<4x8xf32> -> vector<4x8xf32>
    %c0_13 = arith.constant 0 : index
    %c0_14 = arith.constant 0 : index
    %19 = vector.load %arg5[%c0_13, %c0_14] : memref<4x1xf32, #tpu.memory_space<vmem>>, vector<4x1xf32>
    %20 = vector.broadcast %19 : vector<4x1xf32> to vector<4x8xf32>
    %21 = arith.addf %18, %20 : vector<4x8xf32>
    %22 = vector.extract_strided_slice %21 {offsets = [0, 0], sizes = [4, 1], strides = [1, 1]} : vector<4x8xf32> to vector<4x1xf32>
    %23 = arith.negf %22 : vector<4x1xf32>
    %24 = math.exp %23 : vector<4x1xf32>
    %cst_15 = arith.constant 1.000000e+00 : f32
    %25 = vector.broadcast %cst_15 : f32 to vector<4x1xf32>
    %26 = arith.addf %25, %24 : vector<4x1xf32>
    %27 = arith.divf %25, %26 : vector<4x1xf32>
    %28 = arith.truncf %27 : vector<4x1xf32> to vector<4x1xbf16>
    %29 = vector.broadcast %28 : vector<4x1xbf16> to vector<4x256xbf16>
    %30 = arith.mulf %1, %29 : vector<4x256xbf16>
    %cst_16 = arith.constant dense<0xFF80> : vector<256xbf16>
    %31 = vector.multi_reduction <maximumf>, %30, %cst_16 [0] : vector<4x256xbf16> to vector<256xbf16>
    %32 = vector.shape_cast %31 : vector<256xbf16> to vector<1x256xbf16>
    %33 = arith.extf %32 : vector<1x256xbf16> to vector<1x256xf32>
    %cst_17 = arith.constant 1.000000e+00 : bf16
    %34 = vector.broadcast %cst_17 : bf16 to vector<8x4xbf16>
    %cst_18 = arith.constant dense<0.000000e+00> : vector<8x256xf32>
    %35 = tpu.matmul %34, %30, %cst_18 {dimension_numbers = #tpu.dot_dimension_numbers<[1], [0], [0], [1], [0, 0, 1, 1], [], []>} : vector<8x4xbf16>, vector<4x256xbf16>, vector<8x256xf32> -> vector<8x256xf32>
    %36 = vector.extract_strided_slice %35 {offsets = [0, 0], sizes = [1, 256], strides = [1, 1]} : vector<8x256xf32> to vector<1x256xf32>
    %cst_19 = arith.constant 2.500000e-01 : f32
    %37 = vector.broadcast %cst_19 : f32 to vector<1x256xf32>
    %38 = arith.mulf %36, %37 : vector<1x256xf32>
    %cst_20 = arith.constant 0.000000e+00 : f32
    %39 = vector.broadcast %cst_20 : f32 to vector<1x51xf32>
    %c0_21 = arith.constant 0 : index
    %c0_22 = arith.constant 0 : index
    %40 = vector.load %arg11[%c0_21, %c0_22] : memref<1x358xf32, #tpu.memory_space<vmem>>, vector<1x51xf32>
    tpu.vector_store %arg11[%c0_21, %c0_22], %39 {strides = array<i32>} : memref<1x358xf32, #tpu.memory_space<vmem>>, vector<1x51xf32>,
    %c0_23 = arith.constant 0 : index
    %c307 = arith.constant 307 : index
    %41 = vector.load %arg11[%c0_23, %c307] : memref<1x358xf32, #tpu.memory_space<vmem>>, vector<1x51xf32>
    tpu.vector_store %arg11[%c0_23, %c307], %39 {strides = array<i32>} : memref<1x358xf32, #tpu.memory_space<vmem>>, vector<1x51xf32>,
    %c0_24 = arith.constant 0 : index
    %c51 = arith.constant 51 : index
    %42 = vector.load %arg11[%c0_24, %c51] : memref<1x358xf32, #tpu.memory_space<vmem>>, vector<1x256xf32>
    tpu.vector_store %arg11[%c0_24, %c51], %33 {strides = array<i32>} : memref<1x358xf32, #tpu.memory_space<vmem>>, vector<1x256xf32>,
    %c0_25 = arith.constant 0 : index
    %c0_26 = arith.constant 0 : index
    %43 = vector.load %arg12[%c0_25, %c0_26] : memref<1x358xf32, #tpu.memory_space<vmem>>, vector<1x51xf32>
    tpu.vector_store %arg12[%c0_25, %c0_26], %39 {strides = array<i32>} : memref<1x358xf32, #tpu.memory_space<vmem>>, vector<1x51xf32>,
    %c0_27 = arith.constant 0 : index
    %c307_28 = arith.constant 307 : index
    %44 = vector.load %arg12[%c0_27, %c307_28] : memref<1x358xf32, #tpu.memory_space<vmem>>, vector<1x51xf32>
    tpu.vector_store %arg12[%c0_27, %c307_28], %39 {strides = array<i32>} : memref<1x358xf32, #tpu.memory_space<vmem>>, vector<1x51xf32>,
    %c0_29 = arith.constant 0 : index
    %c51_30 = arith.constant 51 : index
    %45 = vector.load %arg12[%c0_29, %c51_30] : memref<1x358xf32, #tpu.memory_space<vmem>>, vector<1x256xf32>
    tpu.vector_store %arg12[%c0_29, %c51_30], %38 {strides = array<i32>} : memref<1x358xf32, #tpu.memory_space<vmem>>, vector<1x256xf32>,
    %46 = tpu.iota {dimensions = array<i32: 1>} : vector<1x256xi32>
    %c16_i32 = arith.constant 16 : i32
    %c0_i32 = arith.constant 0 : i32
    %47 = arith.cmpi eq, %c16_i32, %c0_i32 : i32
    %c1_i32 = arith.constant 1 : i32
    %48 = arith.select %47, %c1_i32, %c16_i32 : i32
    %49 = vector.broadcast %48 : i32 to vector<1x256xi32>
    %50 = arith.remsi %46, %49 : vector<1x256xi32>
    %c0_i32_31 = arith.constant 0 : i32
    %51 = vector.broadcast %c0_i32_31 : i32 to vector<1x256xi32>
    %52 = arith.cmpi ne, %50, %51 : vector<1x256xi32>
    %c0_i32_32 = arith.constant 0 : i32
    %53 = vector.broadcast %c0_i32_32 : i32 to vector<1x256xi32>
    %54 = arith.cmpi slt, %50, %53 : vector<1x256xi32>
    %c0_i32_33 = arith.constant 0 : i32
    %55 = arith.cmpi slt, %48, %c0_i32_33 : i32
    %56 = vector.broadcast %55 : i1 to vector<1x256xi1>
    %57 = vector.broadcast %56 : vector<1x256xi1> to vector<1x256xi1>
    %58 = arith.xori %54, %57 : vector<1x256xi1>
    %59 = arith.andi %58, %52 : vector<1x256xi1>
    %60 = vector.broadcast %48 : i32 to vector<1x256xi32>
    %61 = arith.addi %50, %60 : vector<1x256xi32>
    %62 = arith.select %59, %61, %50 : vector<1x256xi1>, vector<1x256xi32>
    %cst_34 = arith.constant 0.000000e+00 : f32
    %63 = vector.broadcast %cst_34 : f32 to vector<1x256xf32>
    %cst_35 = arith.constant 0.000000e+00 : f32
    %64 = vector.broadcast %cst_35 : f32 to vector<1x256xf32>
    %c0_36 = arith.constant 0 : index
    %65 = memref.load %arg6[%c0_36] : memref<98xf32, #tpu.memory_space<smem>>
    %c0_37 = arith.constant 0 : index
    %c0_38 = arith.constant 0 : index
    %66 = vector.load %arg11[%c0_37, %c0_38] : memref<1x358xf32, #tpu.memory_space<vmem>>, vector<1x256xf32>
    %67 = vector.broadcast %65 : f32 to vector<1x256xf32>
    %68 = arith.mulf %67, %66 : vector<1x256xf32>
    %c49 = arith.constant 49 : index
    %69 = memref.load %arg6[%c49] : memref<98xf32, #tpu.memory_space<smem>>
    %c0_39 = arith.constant 0 : index
    %c0_40 = arith.constant 0 : index
    %70 = vector.load %arg12[%c0_39, %c0_40] : memref<1x358xf32, #tpu.memory_space<vmem>>, vector<1x256xf32>
    %71 = vector.broadcast %69 : f32 to vector<1x256xf32>
    %72 = arith.mulf %71, %70 : vector<1x256xf32>
    %73 = arith.addf %68, %72 : vector<1x256xf32>
    %74 = arith.addf %64, %73 : vector<1x256xf32>
    %c7 = arith.constant 7 : index
    %75 = memref.load %arg6[%c7] : memref<98xf32, #tpu.memory_space<smem>>
    %c0_41 = arith.constant 0 : index
    %c16 = arith.constant 16 : index
    %76 = vector.load %arg11[%c0_41, %c16] : memref<1x358xf32, #tpu.memory_space<vmem>>, vector<1x256xf32>
    %77 = vector.broadcast %75 : f32 to vector<1x256xf32>
    %78 = arith.mulf %77, %76 : vector<1x256xf32>
    %c56 = arith.constant 56 : index
    %79 = memref.load %arg6[%c56] : memref<98xf32, #tpu.memory_space<smem>>
    %c0_42 = arith.constant 0 : index
    %c16_43 = arith.constant 16 : index
    %80 = vector.load %arg12[%c0_42, %c16_43] : memref<1x358xf32, #tpu.memory_space<vmem>>, vector<1x256xf32>
    %81 = vector.broadcast %79 : f32 to vector<1x256xf32>
    %82 = arith.mulf %81, %80 : vector<1x256xf32>
    %83 = arith.addf %78, %82 : vector<1x256xf32>
    %84 = arith.addf %74, %83 : vector<1x256xf32>
    %c14 = arith.constant 14 : index
    %85 = memref.load %arg6[%c14] : memref<98xf32, #tpu.memory_space<smem>>
    %c0_44 = arith.constant 0 : index
    %c32 = arith.constant 32 : index
    %86 = vector.load %arg11[%c0_44, %c32] : memref<1x358xf32, #tpu.memory_space<vmem>>, vector<1x256xf32>
    %87 = vector.broadcast %85 : f32 to vector<1x256xf32>
    %88 = arith.mulf %87, %86 : vector<1x256xf32>
    %c63 = arith.constant 63 : index
    %89 = memref.load %arg6[%c63] : memref<98xf32, #tpu.memory_space<smem>>
    %c0_45 = arith.constant 0 : index
    %c32_46 = arith.constant 32 : index
    %90 = vector.load %arg12[%c0_45, %c32_46] : memref<1x358xf32, #tpu.memory_space<vmem>>, vector<1x256xf32>
    %91 = vector.broadcast %89 : f32 to vector<1x256xf32>
    %92 = arith.mulf %91, %90 : vector<1x256xf32>
    %93 = arith.addf %88, %92 : vector<1x256xf32>
    %94 = arith.addf %84, %93 : vector<1x256xf32>
    %c21 = arith.constant 21 : index
    %95 = memref.load %arg6[%c21] : memref<98xf32, #tpu.memory_space<smem>>
    %c0_47 = arith.constant 0 : index
    %c48 = arith.constant 48 : index
    %96 = vector.load %arg11[%c0_47, %c48] : memref<1x358xf32, #tpu.memory_space<vmem>>, vector<1x256xf32>
    %97 = vector.broadcast %95 : f32 to vector<1x256xf32>
    %98 = arith.mulf %97, %96 : vector<1x256xf32>
    %c70 = arith.constant 70 : index
    %99 = memref.load %arg6[%c70] : memref<98xf32, #tpu.memory_space<smem>>
    %c0_48 = arith.constant 0 : index
    %c48_49 = arith.constant 48 : index
    %100 = vector.load %arg12[%c0_48, %c48_49] : memref<1x358xf32, #tpu.memory_space<vmem>>, vector<1x256xf32>
    %101 = vector.broadcast %99 : f32 to vector<1x256xf32>
    %102 = arith.mulf %101, %100 : vector<1x256xf32>
    %103 = arith.addf %98, %102 : vector<1x256xf32>
    %104 = arith.addf %94, %103 : vector<1x256xf32>
    %c28 = arith.constant 28 : index
    %105 = memref.load %arg6[%c28] : memref<98xf32, #tpu.memory_space<smem>>
    %c0_50 = arith.constant 0 : index
    %c64 = arith.constant 64 : index
    %106 = vector.load %arg11[%c0_50, %c64] : memref<1x358xf32, #tpu.memory_space<vmem>>, vector<1x256xf32>
    %107 = vector.broadcast %105 : f32 to vector<1x256xf32>
    %108 = arith.mulf %107, %106 : vector<1x256xf32>
    %c77 = arith.constant 77 : index
    %109 = memref.load %arg6[%c77] : memref<98xf32, #tpu.memory_space<smem>>
    %c0_51 = arith.constant 0 : index
    %c64_52 = arith.constant 64 : index
    %110 = vector.load %arg12[%c0_51, %c64_52] : memref<1x358xf32, #tpu.memory_space<vmem>>, vector<1x256xf32>
    %111 = vector.broadcast %109 : f32 to vector<1x256xf32>
    %112 = arith.mulf %111, %110 : vector<1x256xf32>
    %113 = arith.addf %108, %112 : vector<1x256xf32>
    %114 = arith.addf %104, %113 : vector<1x256xf32>
    %c35 = arith.constant 35 : index
    %115 = memref.load %arg6[%c35] : memref<98xf32, #tpu.memory_space<smem>>
    %c0_53 = arith.constant 0 : index
    %c80 = arith.constant 80 : index
    %116 = vector.load %arg11[%c0_53, %c80] : memref<1x358xf32, #tpu.memory_space<vmem>>, vector<1x256xf32>
    %117 = vector.broadcast %115 : f32 to vector<1x256xf32>
    %118 = arith.mulf %117, %116 : vector<1x256xf32>
    %c84 = arith.constant 84 : index
    %119 = memref.load %arg6[%c84] : memref<98xf32, #tpu.memory_space<smem>>
    %c0_54 = arith.constant 0 : index
    %c80_55 = arith.constant 80 : index
    %120 = vector.load %arg12[%c0_54, %c80_55] : memref<1x358xf32, #tpu.memory_space<vmem>>, vector<1x256xf32>
    %121 = vector.broadcast %119 : f32 to vector<1x256xf32>
    %122 = arith.mulf %121, %120 : vector<1x256xf32>
    %123 = arith.addf %118, %122 : vector<1x256xf32>
    %124 = arith.addf %114, %123 : vector<1x256xf32>
    %c42 = arith.constant 42 : index
    %125 = memref.load %arg6[%c42] : memref<98xf32, #tpu.memory_space<smem>>
    %c0_56 = arith.constant 0 : index
    %c96 = arith.constant 96 : index
    %126 = vector.load %arg11[%c0_56, %c96] : memref<1x358xf32, #tpu.memory_space<vmem>>, vector<1x256xf32>
    %127 = vector.broadcast %125 : f32 to vector<1x256xf32>
    %128 = arith.mulf %127, %126 : vector<1x256xf32>
    %c91 = arith.constant 91 : index
    %129 = memref.load %arg6[%c91] : memref<98xf32, #tpu.memory_space<smem>>
    %c0_57 = arith.constant 0 : index
    %c96_58 = arith.constant 96 : index
    %130 = vector.load %arg12[%c0_57, %c96_58] : memref<1x358xf32, #tpu.memory_space<vmem>>, vector<1x256xf32>
    %131 = vector.broadcast %129 : f32 to vector<1x256xf32>
    %132 = arith.mulf %131, %130 : vector<1x256xf32>
    %133 = arith.addf %128, %132 : vector<1x256xf32>
    %134 = arith.addf %124, %133 : vector<1x256xf32>
    %c3_i32 = arith.constant 3 : i32
    %135 = vector.broadcast %c3_i32 : i32 to vector<1x256xi32>
    %136 = arith.cmpi sge, %62, %135 : vector<1x256xi32>
    %c18_i32 = arith.constant 18 : i32
    %137 = vector.broadcast %c18_i32 : i32 to vector<1x256xi32>
    %138 = arith.cmpi sle, %62, %137 : vector<1x256xi32>
    %139 = arith.andi %136, %138 : vector<1x256xi1>
    %cst_59 = arith.constant 0.000000e+00 : f32
    %140 = vector.broadcast %cst_59 : f32 to vector<1x256xf32>
    %141 = arith.select %139, %134, %140 : vector<1x256xi1>, vector<1x256xf32>
    %142 = arith.addf %63, %141 : vector<1x256xf32>
    %cst_60 = arith.constant 0.000000e+00 : f32
    %143 = vector.broadcast %cst_60 : f32 to vector<1x256xf32>
    %c1 = arith.constant 1 : index
    %144 = memref.load %arg6[%c1] : memref<98xf32, #tpu.memory_space<smem>>
    %c0_61 = arith.constant 0 : index
    %c1_62 = arith.constant 1 : index
    %145 = vector.load %arg11[%c0_61, %c1_62] : memref<1x358xf32, #tpu.memory_space<vmem>>, vector<1x256xf32>
    %146 = vector.broadcast %144 : f32 to vector<1x256xf32>
    %147 = arith.mulf %146, %145 : vector<1x256xf32>
    %c50 = arith.constant 50 : index
    %148 = memref.load %arg6[%c50] : memref<98xf32, #tpu.memory_space<smem>>
    %c0_63 = arith.constant 0 : index
    %c1_64 = arith.constant 1 : index
    %149 = vector.load %arg12[%c0_63, %c1_64] : memref<1x358xf32, #tpu.memory_space<vmem>>, vector<1x256xf32>
    %150 = vector.broadcast %148 : f32 to vector<1x256xf32>
    %151 = arith.mulf %150, %149 : vector<1x256xf32>
    %152 = arith.addf %147, %151 : vector<1x256xf32>
    %153 = arith.addf %143, %152 : vector<1x256xf32>
    %c8 = arith.constant 8 : index
    %154 = memref.load %arg6[%c8] : memref<98xf32, #tpu.memory_space<smem>>
    %c0_65 = arith.constant 0 : index
    %c17 = arith.constant 17 : index
    %155 = vector.load %arg11[%c0_65, %c17] : memref<1x358xf32, #tpu.memory_space<vmem>>, vector<1x256xf32>
    %156 = vector.broadcast %154 : f32 to vector<1x256xf32>
    %157 = arith.mulf %156, %155 : vector<1x256xf32>
    %c57 = arith.constant 57 : index
    %158 = memref.load %arg6[%c57] : memref<98xf32, #tpu.memory_space<smem>>
    %c0_66 = arith.constant 0 : index
    %c17_67 = arith.constant 17 : index
    %159 = vector.load %arg12[%c0_66, %c17_67] : memref<1x358xf32, #tpu.memory_space<vmem>>, vector<1x256xf32>
    %160 = vector.broadcast %158 : f32 to vector<1x256xf32>
    %161 = arith.mulf %160, %159 : vector<1x256xf32>
    %162 = arith.addf %157, %161 : vector<1x256xf32>
    %163 = arith.addf %153, %162 : vector<1x256xf32>
    %c15 = arith.constant 15 : index
    %164 = memref.load %arg6[%c15] : memref<98xf32, #tpu.memory_space<smem>>
    %c0_68 = arith.constant 0 : index
    %c33 = arith.constant 33 : index
    %165 = vector.load %arg11[%c0_68, %c33] : memref<1x358xf32, #tpu.memory_space<vmem>>, vector<1x256xf32>
    %166 = vector.broadcast %164 : f32 to vector<1x256xf32>
    %167 = arith.mulf %166, %165 : vector<1x256xf32>
    %c64_69 = arith.constant 64 : index
    %168 = memref.load %arg6[%c64_69] : memref<98xf32, #tpu.memory_space<smem>>
    %c0_70 = arith.constant 0 : index
    %c33_71 = arith.constant 33 : index
    %169 = vector.load %arg12[%c0_70, %c33_71] : memref<1x358xf32, #tpu.memory_space<vmem>>, vector<1x256xf32>
    %170 = vector.broadcast %168 : f32 to vector<1x256xf32>
    %171 = arith.mulf %170, %169 : vector<1x256xf32>
    %172 = arith.addf %167, %171 : vector<1x256xf32>
    %173 = arith.addf %163, %172 : vector<1x256xf32>
    %c22 = arith.constant 22 : index
    %174 = memref.load %arg6[%c22] : memref<98xf32, #tpu.memory_space<smem>>
    %c0_72 = arith.constant 0 : index
    %c49_73 = arith.constant 49 : index
    %175 = vector.load %arg11[%c0_72, %c49_73] : memref<1x358xf32, #tpu.memory_space<vmem>>, vector<1x256xf32>
    %176 = vector.broadcast %174 : f32 to vector<1x256xf32>
    %177 = arith.mulf %176, %175 : vector<1x256xf32>
    %c71 = arith.constant 71 : index
    %178 = memref.load %arg6[%c71] : memref<98xf32, #tpu.memory_space<smem>>
    %c0_74 = arith.constant 0 : index
    %c49_75 = arith.constant 49 : index
    %179 = vector.load %arg12[%c0_74, %c49_75] : memref<1x358xf32, #tpu.memory_space<vmem>>, vector<1x256xf32>
    %180 = vector.broadcast %178 : f32 to vector<1x256xf32>
    %181 = arith.mulf %180, %179 : vector<1x256xf32>
    %182 = arith.addf %177, %181 : vector<1x256xf32>
    %183 = arith.addf %173, %182 : vector<1x256xf32>
    %c29 = arith.constant 29 : index
    %184 = memref.load %arg6[%c29] : memref<98xf32, #tpu.memory_space<smem>>
    %c0_76 = arith.constant 0 : index
    %c65 = arith.constant 65 : index
    %185 = vector.load %arg11[%c0_76, %c65] : memref<1x358xf32, #tpu.memory_space<vmem>>, vector<1x256xf32>
    %186 = vector.broadcast %184 : f32 to vector<1x256xf32>
    %187 = arith.mulf %186, %185 : vector<1x256xf32>
    %c78 = arith.constant 78 : index
    %188 = memref.load %arg6[%c78] : memref<98xf32, #tpu.memory_space<smem>>
    %c0_77 = arith.constant 0 : index
    %c65_78 = arith.constant 65 : index
    %189 = vector.load %arg12[%c0_77, %c65_78] : memref<1x358xf32, #tpu.memory_space<vmem>>, vector<1x256xf32>
    %190 = vector.broadcast %188 : f32 to vector<1x256xf32>
    %191 = arith.mulf %190, %189 : vector<1x256xf32>
    %192 = arith.addf %187, %191 : vector<1x256xf32>
    %193 = arith.addf %183, %192 : vector<1x256xf32>
    %c36 = arith.constant 36 : index
    %194 = memref.load %arg6[%c36] : memref<98xf32, #tpu.memory_space<smem>>
    %c0_79 = arith.constant 0 : index
    %c81 = arith.constant 81 : index
    %195 = vector.load %arg11[%c0_79, %c81] : memref<1x358xf32, #tpu.memory_space<vmem>>, vector<1x256xf32>
    %196 = vector.broadcast %194 : f32 to vector<1x256xf32>
    %197 = arith.mulf %196, %195 : vector<1x256xf32>
    %c85 = arith.constant 85 : index
    %198 = memref.load %arg6[%c85] : memref<98xf32, #tpu.memory_space<smem>>
    %c0_80 = arith.constant 0 : index
    %c81_81 = arith.constant 81 : index
    %199 = vector.load %arg12[%c0_80, %c81_81] : memref<1x358xf32, #tpu.memory_space<vmem>>, vector<1x256xf32>
    %200 = vector.broadcast %198 : f32 to vector<1x256xf32>
    %201 = arith.mulf %200, %199 : vector<1x256xf32>
    %202 = arith.addf %197, %201 : vector<1x256xf32>
    %203 = arith.addf %193, %202 : vector<1x256xf32>
    %c43 = arith.constant 43 : index
    %204 = memref.load %arg6[%c43] : memref<98xf32, #tpu.memory_space<smem>>
    %c0_82 = arith.constant 0 : index
    %c97 = arith.constant 97 : index
    %205 = vector.load %arg11[%c0_82, %c97] : memref<1x358xf32, #tpu.memory_space<vmem>>, vector<1x256xf32>
    %206 = vector.broadcast %204 : f32 to vector<1x256xf32>
    %207 = arith.mulf %206, %205 : vector<1x256xf32>
    %c92 = arith.constant 92 : index
    %208 = memref.load %arg6[%c92] : memref<98xf32, #tpu.memory_space<smem>>
    %c0_83 = arith.constant 0 : index
    %c97_84 = arith.constant 97 : index
    %209 = vector.load %arg12[%c0_83, %c97_84] : memref<1x358xf32, #tpu.memory_space<vmem>>, vector<1x256xf32>
    %210 = vector.broadcast %208 : f32 to vector<1x256xf32>
    %211 = arith.mulf %210, %209 : vector<1x256xf32>
    %212 = arith.addf %207, %211 : vector<1x256xf32>
    %213 = arith.addf %203, %212 : vector<1x256xf32>
    %c2_i32 = arith.constant 2 : i32
    %214 = vector.broadcast %c2_i32 : i32 to vector<1x256xi32>
    %215 = arith.cmpi sge, %62, %214 : vector<1x256xi32>
    %c17_i32 = arith.constant 17 : i32
    %216 = vector.broadcast %c17_i32 : i32 to vector<1x256xi32>
    %217 = arith.cmpi sle, %62, %216 : vector<1x256xi32>
    %218 = arith.andi %215, %217 : vector<1x256xi1>
    %cst_85 = arith.constant 0.000000e+00 : f32
    %219 = vector.broadcast %cst_85 : f32 to vector<1x256xf32>
    %220 = arith.select %218, %213, %219 : vector<1x256xi1>, vector<1x256xf32>
    %221 = arith.addf %142, %220 : vector<1x256xf32>
    %cst_86 = arith.constant 0.000000e+00 : f32
    %222 = vector.broadcast %cst_86 : f32 to vector<1x256xf32>
    %c2 = arith.constant 2 : index
    %223 = memref.load %arg6[%c2] : memref<98xf32, #tpu.memory_space<smem>>
    %c0_87 = arith.constant 0 : index
    %c2_88 = arith.constant 2 : index
    %224 = vector.load %arg11[%c0_87, %c2_88] : memref<1x358xf32, #tpu.memory_space<vmem>>, vector<1x256xf32>
    %225 = vector.broadcast %223 : f32 to vector<1x256xf32>
    %226 = arith.mulf %225, %224 : vector<1x256xf32>
    %c51_89 = arith.constant 51 : index
    %227 = memref.load %arg6[%c51_89] : memref<98xf32, #tpu.memory_space<smem>>
    %c0_90 = arith.constant 0 : index
    %c2_91 = arith.constant 2 : index
    %228 = vector.load %arg12[%c0_90, %c2_91] : memref<1x358xf32, #tpu.memory_space<vmem>>, vector<1x256xf32>
    %229 = vector.broadcast %227 : f32 to vector<1x256xf32>
    %230 = arith.mulf %229, %228 : vector<1x256xf32>
    %231 = arith.addf %226, %230 : vector<1x256xf32>
    %232 = arith.addf %222, %231 : vector<1x256xf32>
    %c9 = arith.constant 9 : index
    %233 = memref.load %arg6[%c9] : memref<98xf32, #tpu.memory_space<smem>>
    %c0_92 = arith.constant 0 : index
    %c18 = arith.constant 18 : index
    %234 = vector.load %arg11[%c0_92, %c18] : memref<1x358xf32, #tpu.memory_space<vmem>>, vector<1x256xf32>
    %235 = vector.broadcast %233 : f32 to vector<1x256xf32>
    %236 = arith.mulf %235, %234 : vector<1x256xf32>
    %c58 = arith.constant 58 : index
    %237 = memref.load %arg6[%c58] : memref<98xf32, #tpu.memory_space<smem>>
    %c0_93 = arith.constant 0 : index
    %c18_94 = arith.constant 18 : index
    %238 = vector.load %arg12[%c0_93, %c18_94] : memref<1x358xf32, #tpu.memory_space<vmem>>, vector<1x256xf32>
    %239 = vector.broadcast %237 : f32 to vector<1x256xf32>
    %240 = arith.mulf %239, %238 : vector<1x256xf32>
    %241 = arith.addf %236, %240 : vector<1x256xf32>
    %242 = arith.addf %232, %241 : vector<1x256xf32>
    %c16_95 = arith.constant 16 : index
    %243 = memref.load %arg6[%c16_95] : memref<98xf32, #tpu.memory_space<smem>>
    %c0_96 = arith.constant 0 : index
    %c34 = arith.constant 34 : index
    %244 = vector.load %arg11[%c0_96, %c34] : memref<1x358xf32, #tpu.memory_space<vmem>>, vector<1x256xf32>
    %245 = vector.broadcast %243 : f32 to vector<1x256xf32>
    %246 = arith.mulf %245, %244 : vector<1x256xf32>
    %c65_97 = arith.constant 65 : index
    %247 = memref.load %arg6[%c65_97] : memref<98xf32, #tpu.memory_space<smem>>
    %c0_98 = arith.constant 0 : index
    %c34_99 = arith.constant 34 : index
    %248 = vector.load %arg12[%c0_98, %c34_99] : memref<1x358xf32, #tpu.memory_space<vmem>>, vector<1x256xf32>
    %249 = vector.broadcast %247 : f32 to vector<1x256xf32>
    %250 = arith.mulf %249, %248 : vector<1x256xf32>
    %251 = arith.addf %246, %250 : vector<1x256xf32>
    %252 = arith.addf %242, %251 : vector<1x256xf32>
    %c23 = arith.constant 23 : index
    %253 = memref.load %arg6[%c23] : memref<98xf32, #tpu.memory_space<smem>>
    %c0_100 = arith.constant 0 : index
    %c50_101 = arith.constant 50 : index
    %254 = vector.load %arg11[%c0_100, %c50_101] : memref<1x358xf32, #tpu.memory_space<vmem>>, vector<1x256xf32>
    %255 = vector.broadcast %253 : f32 to vector<1x256xf32>
    %256 = arith.mulf %255, %254 : vector<1x256xf32>
    %c72 = arith.constant 72 : index
    %257 = memref.load %arg6[%c72] : memref<98xf32, #tpu.memory_space<smem>>
    %c0_102 = arith.constant 0 : index
    %c50_103 = arith.constant 50 : index
    %258 = vector.load %arg12[%c0_102, %c50_103] : memref<1x358xf32, #tpu.memory_space<vmem>>, vector<1x256xf32>
    %259 = vector.broadcast %257 : f32 to vector<1x256xf32>
    %260 = arith.mulf %259, %258 : vector<1x256xf32>
    %261 = arith.addf %256, %260 : vector<1x256xf32>
    %262 = arith.addf %252, %261 : vector<1x256xf32>
    %c30 = arith.constant 30 : index
    %263 = memref.load %arg6[%c30] : memref<98xf32, #tpu.memory_space<smem>>
    %c0_104 = arith.constant 0 : index
    %c66 = arith.constant 66 : index
    %264 = vector.load %arg11[%c0_104, %c66] : memref<1x358xf32, #tpu.memory_space<vmem>>, vector<1x256xf32>
    %265 = vector.broadcast %263 : f32 to vector<1x256xf32>
    %266 = arith.mulf %265, %264 : vector<1x256xf32>
    %c79 = arith.constant 79 : index
    %267 = memref.load %arg6[%c79] : memref<98xf32, #tpu.memory_space<smem>>
    %c0_105 = arith.constant 0 : index
    %c66_106 = arith.constant 66 : index
    %268 = vector.load %arg12[%c0_105, %c66_106] : memref<1x358xf32, #tpu.memory_space<vmem>>, vector<1x256xf32>
    %269 = vector.broadcast %267 : f32 to vector<1x256xf32>
    %270 = arith.mulf %269, %268 : vector<1x256xf32>
    %271 = arith.addf %266, %270 : vector<1x256xf32>
    %272 = arith.addf %262, %271 : vector<1x256xf32>
    %c37 = arith.constant 37 : index
    %273 = memref.load %arg6[%c37] : memref<98xf32, #tpu.memory_space<smem>>
    %c0_107 = arith.constant 0 : index
    %c82 = arith.constant 82 : index
    %274 = vector.load %arg11[%c0_107, %c82] : memref<1x358xf32, #tpu.memory_space<vmem>>, vector<1x256xf32>
    %275 = vector.broadcast %273 : f32 to vector<1x256xf32>
    %276 = arith.mulf %275, %274 : vector<1x256xf32>
    %c86 = arith.constant 86 : index
    %277 = memref.load %arg6[%c86] : memref<98xf32, #tpu.memory_space<smem>>
    %c0_108 = arith.constant 0 : index
    %c82_109 = arith.constant 82 : index
    %278 = vector.load %arg12[%c0_108, %c82_109] : memref<1x358xf32, #tpu.memory_space<vmem>>, vector<1x256xf32>
    %279 = vector.broadcast %277 : f32 to vector<1x256xf32>
    %280 = arith.mulf %279, %278 : vector<1x256xf32>
    %281 = arith.addf %276, %280 : vector<1x256xf32>
    %282 = arith.addf %272, %281 : vector<1x256xf32>
    %c44 = arith.constant 44 : index
    %283 = memref.load %arg6[%c44] : memref<98xf32, #tpu.memory_space<smem>>
    %c0_110 = arith.constant 0 : index
    %c98 = arith.constant 98 : index
    %284 = vector.load %arg11[%c0_110, %c98] : memref<1x358xf32, #tpu.memory_space<vmem>>, vector<1x256xf32>
    %285 = vector.broadcast %283 : f32 to vector<1x256xf32>
    %286 = arith.mulf %285, %284 : vector<1x256xf32>
    %c93 = arith.constant 93 : index
    %287 = memref.load %arg6[%c93] : memref<98xf32, #tpu.memory_space<smem>>
    %c0_111 = arith.constant 0 : index
    %c98_112 = arith.constant 98 : index
    %288 = vector.load %arg12[%c0_111, %c98_112] : memref<1x358xf32, #tpu.memory_space<vmem>>, vector<1x256xf32>
    %289 = vector.broadcast %287 : f32 to vector<1x256xf32>
    %290 = arith.mulf %289, %288 : vector<1x256xf32>
    %291 = arith.addf %286, %290 : vector<1x256xf32>
    %292 = arith.addf %282, %291 : vector<1x256xf32>
    %c1_i32_113 = arith.constant 1 : i32
    %293 = vector.broadcast %c1_i32_113 : i32 to vector<1x256xi32>
    %294 = arith.cmpi sge, %62, %293 : vector<1x256xi32>
    %c16_i32_114 = arith.constant 16 : i32
    %295 = vector.broadcast %c16_i32_114 : i32 to vector<1x256xi32>
    %296 = arith.cmpi sle, %62, %295 : vector<1x256xi32>
    %297 = arith.andi %294, %296 : vector<1x256xi1>
    %cst_115 = arith.constant 0.000000e+00 : f32
    %298 = vector.broadcast %cst_115 : f32 to vector<1x256xf32>
    %299 = arith.select %297, %292, %298 : vector<1x256xi1>, vector<1x256xf32>
    %300 = arith.addf %221, %299 : vector<1x256xf32>
    %cst_116 = arith.constant 0.000000e+00 : f32
    %301 = vector.broadcast %cst_116 : f32 to vector<1x256xf32>
    %c3 = arith.constant 3 : index
    %302 = memref.load %arg6[%c3] : memref<98xf32, #tpu.memory_space<smem>>
    %c0_117 = arith.constant 0 : index
    %c3_118 = arith.constant 3 : index
    %303 = vector.load %arg11[%c0_117, %c3_118] : memref<1x358xf32, #tpu.memory_space<vmem>>, vector<1x256xf32>
    %304 = vector.broadcast %302 : f32 to vector<1x256xf32>
    %305 = arith.mulf %304, %303 : vector<1x256xf32>
    %c52 = arith.constant 52 : index
    %306 = memref.load %arg6[%c52] : memref<98xf32, #tpu.memory_space<smem>>
    %c0_119 = arith.constant 0 : index
    %c3_120 = arith.constant 3 : index
    %307 = vector.load %arg12[%c0_119, %c3_120] : memref<1x358xf32, #tpu.memory_space<vmem>>, vector<1x256xf32>
    %308 = vector.broadcast %306 : f32 to vector<1x256xf32>
    %309 = arith.mulf %308, %307 : vector<1x256xf32>
    %310 = arith.addf %305, %309 : vector<1x256xf32>
    %311 = arith.addf %301, %310 : vector<1x256xf32>
    %c10 = arith.constant 10 : index
    %312 = memref.load %arg6[%c10] : memref<98xf32, #tpu.memory_space<smem>>
    %c0_121 = arith.constant 0 : index
    %c19 = arith.constant 19 : index
    %313 = vector.load %arg11[%c0_121, %c19] : memref<1x358xf32, #tpu.memory_space<vmem>>, vector<1x256xf32>
    %314 = vector.broadcast %312 : f32 to vector<1x256xf32>
    %315 = arith.mulf %314, %313 : vector<1x256xf32>
    %c59 = arith.constant 59 : index
    %316 = memref.load %arg6[%c59] : memref<98xf32, #tpu.memory_space<smem>>
    %c0_122 = arith.constant 0 : index
    %c19_123 = arith.constant 19 : index
    %317 = vector.load %arg12[%c0_122, %c19_123] : memref<1x358xf32, #tpu.memory_space<vmem>>, vector<1x256xf32>
    %318 = vector.broadcast %316 : f32 to vector<1x256xf32>
    %319 = arith.mulf %318, %317 : vector<1x256xf32>
    %320 = arith.addf %315, %319 : vector<1x256xf32>
    %321 = arith.addf %311, %320 : vector<1x256xf32>
    %c17_124 = arith.constant 17 : index
    %322 = memref.load %arg6[%c17_124] : memref<98xf32, #tpu.memory_space<smem>>
    %c0_125 = arith.constant 0 : index
    %c35_126 = arith.constant 35 : index
    %323 = vector.load %arg11[%c0_125, %c35_126] : memref<1x358xf32, #tpu.memory_space<vmem>>, vector<1x256xf32>
    %324 = vector.broadcast %322 : f32 to vector<1x256xf32>
    %325 = arith.mulf %324, %323 : vector<1x256xf32>
    %c66_127 = arith.constant 66 : index
    %326 = memref.load %arg6[%c66_127] : memref<98xf32, #tpu.memory_space<smem>>
    %c0_128 = arith.constant 0 : index
    %c35_129 = arith.constant 35 : index
    %327 = vector.load %arg12[%c0_128, %c35_129] : memref<1x358xf32, #tpu.memory_space<vmem>>, vector<1x256xf32>
    %328 = vector.broadcast %326 : f32 to vector<1x256xf32>
    %329 = arith.mulf %328, %327 : vector<1x256xf32>
    %330 = arith.addf %325, %329 : vector<1x256xf32>
    %331 = arith.addf %321, %330 : vector<1x256xf32>
    %c24 = arith.constant 24 : index
    %332 = memref.load %arg6[%c24] : memref<98xf32, #tpu.memory_space<smem>>
    %c0_130 = arith.constant 0 : index
    %c51_131 = arith.constant 51 : index
    %333 = vector.load %arg11[%c0_130, %c51_131] : memref<1x358xf32, #tpu.memory_space<vmem>>, vector<1x256xf32>
    %334 = vector.broadcast %332 : f32 to vector<1x256xf32>
    %335 = arith.mulf %334, %333 : vector<1x256xf32>
    %c73 = arith.constant 73 : index
    %336 = memref.load %arg6[%c73] : memref<98xf32, #tpu.memory_space<smem>>
    %c0_132 = arith.constant 0 : index
    %c51_133 = arith.constant 51 : index
    %337 = vector.load %arg12[%c0_132, %c51_133] : memref<1x358xf32, #tpu.memory_space<vmem>>, vector<1x256xf32>
    %338 = vector.broadcast %336 : f32 to vector<1x256xf32>
    %339 = arith.mulf %338, %337 : vector<1x256xf32>
    %340 = arith.addf %335, %339 : vector<1x256xf32>
    %341 = arith.addf %331, %340 : vector<1x256xf32>
    %c31 = arith.constant 31 : index
    %342 = memref.load %arg6[%c31] : memref<98xf32, #tpu.memory_space<smem>>
    %c0_134 = arith.constant 0 : index
    %c67 = arith.constant 67 : index
    %343 = vector.load %arg11[%c0_134, %c67] : memref<1x358xf32, #tpu.memory_space<vmem>>, vector<1x256xf32>
    %344 = vector.broadcast %342 : f32 to vector<1x256xf32>
    %345 = arith.mulf %344, %343 : vector<1x256xf32>
    %c80_135 = arith.constant 80 : index
    %346 = memref.load %arg6[%c80_135] : memref<98xf32, #tpu.memory_space<smem>>
    %c0_136 = arith.constant 0 : index
    %c67_137 = arith.constant 67 : index
    %347 = vector.load %arg12[%c0_136, %c67_137] : memref<1x358xf32, #tpu.memory_space<vmem>>, vector<1x256xf32>
    %348 = vector.broadcast %346 : f32 to vector<1x256xf32>
    %349 = arith.mulf %348, %347 : vector<1x256xf32>
    %350 = arith.addf %345, %349 : vector<1x256xf32>
    %351 = arith.addf %341, %350 : vector<1x256xf32>
    %c38 = arith.constant 38 : index
    %352 = memref.load %arg6[%c38] : memref<98xf32, #tpu.memory_space<smem>>
    %c0_138 = arith.constant 0 : index
    %c83 = arith.constant 83 : index
    %353 = vector.load %arg11[%c0_138, %c83] : memref<1x358xf32, #tpu.memory_space<vmem>>, vector<1x256xf32>
    %354 = vector.broadcast %352 : f32 to vector<1x256xf32>
    %355 = arith.mulf %354, %353 : vector<1x256xf32>
    %c87 = arith.constant 87 : index
    %356 = memref.load %arg6[%c87] : memref<98xf32, #tpu.memory_space<smem>>
    %c0_139 = arith.constant 0 : index
    %c83_140 = arith.constant 83 : index
    %357 = vector.load %arg12[%c0_139, %c83_140] : memref<1x358xf32, #tpu.memory_space<vmem>>, vector<1x256xf32>
    %358 = vector.broadcast %356 : f32 to vector<1x256xf32>
    %359 = arith.mulf %358, %357 : vector<1x256xf32>
    %360 = arith.addf %355, %359 : vector<1x256xf32>
    %361 = arith.addf %351, %360 : vector<1x256xf32>
    %c45 = arith.constant 45 : index
    %362 = memref.load %arg6[%c45] : memref<98xf32, #tpu.memory_space<smem>>
    %c0_141 = arith.constant 0 : index
    %c99 = arith.constant 99 : index
    %363 = vector.load %arg11[%c0_141, %c99] : memref<1x358xf32, #tpu.memory_space<vmem>>, vector<1x256xf32>
    %364 = vector.broadcast %362 : f32 to vector<1x256xf32>
    %365 = arith.mulf %364, %363 : vector<1x256xf32>
    %c94 = arith.constant 94 : index
    %366 = memref.load %arg6[%c94] : memref<98xf32, #tpu.memory_space<smem>>
    %c0_142 = arith.constant 0 : index
    %c99_143 = arith.constant 99 : index
    %367 = vector.load %arg12[%c0_142, %c99_143] : memref<1x358xf32, #tpu.memory_space<vmem>>, vector<1x256xf32>
    %368 = vector.broadcast %366 : f32 to vector<1x256xf32>
    %369 = arith.mulf %368, %367 : vector<1x256xf32>
    %370 = arith.addf %365, %369 : vector<1x256xf32>
    %371 = arith.addf %361, %370 : vector<1x256xf32>
    %c0_i32_144 = arith.constant 0 : i32
    %372 = vector.broadcast %c0_i32_144 : i32 to vector<1x256xi32>
    %373 = arith.cmpi sge, %62, %372 : vector<1x256xi32>
    %c15_i32 = arith.constant 15 : i32
    %374 = vector.broadcast %c15_i32 : i32 to vector<1x256xi32>
    %375 = arith.cmpi sle, %62, %374 : vector<1x256xi32>
    %376 = arith.andi %373, %375 : vector<1x256xi1>
    %cst_145 = arith.constant 0.000000e+00 : f32
    %377 = vector.broadcast %cst_145 : f32 to vector<1x256xf32>
    %378 = arith.select %376, %371, %377 : vector<1x256xi1>, vector<1x256xf32>
    %379 = arith.addf %300, %378 : vector<1x256xf32>
    %cst_146 = arith.constant 0.000000e+00 : f32
    %380 = vector.broadcast %cst_146 : f32 to vector<1x256xf32>
    %c4 = arith.constant 4 : index
    %381 = memref.load %arg6[%c4] : memref<98xf32, #tpu.memory_space<smem>>
    %c0_147 = arith.constant 0 : index
    %c4_148 = arith.constant 4 : index
    %382 = vector.load %arg11[%c0_147, %c4_148] : memref<1x358xf32, #tpu.memory_space<vmem>>, vector<1x256xf32>
    %383 = vector.broadcast %381 : f32 to vector<1x256xf32>
    %384 = arith.mulf %383, %382 : vector<1x256xf32>
    %c53 = arith.constant 53 : index
    %385 = memref.load %arg6[%c53] : memref<98xf32, #tpu.memory_space<smem>>
    %c0_149 = arith.constant 0 : index
    %c4_150 = arith.constant 4 : index
    %386 = vector.load %arg12[%c0_149, %c4_150] : memref<1x358xf32, #tpu.memory_space<vmem>>, vector<1x256xf32>
    %387 = vector.broadcast %385 : f32 to vector<1x256xf32>
    %388 = arith.mulf %387, %386 : vector<1x256xf32>
    %389 = arith.addf %384, %388 : vector<1x256xf32>
    %390 = arith.addf %380, %389 : vector<1x256xf32>
    %c11 = arith.constant 11 : index
    %391 = memref.load %arg6[%c11] : memref<98xf32, #tpu.memory_space<smem>>
    %c0_151 = arith.constant 0 : index
    %c20 = arith.constant 20 : index
    %392 = vector.load %arg11[%c0_151, %c20] : memref<1x358xf32, #tpu.memory_space<vmem>>, vector<1x256xf32>
    %393 = vector.broadcast %391 : f32 to vector<1x256xf32>
    %394 = arith.mulf %393, %392 : vector<1x256xf32>
    %c60 = arith.constant 60 : index
    %395 = memref.load %arg6[%c60] : memref<98xf32, #tpu.memory_space<smem>>
    %c0_152 = arith.constant 0 : index
    %c20_153 = arith.constant 20 : index
    %396 = vector.load %arg12[%c0_152, %c20_153] : memref<1x358xf32, #tpu.memory_space<vmem>>, vector<1x256xf32>
    %397 = vector.broadcast %395 : f32 to vector<1x256xf32>
    %398 = arith.mulf %397, %396 : vector<1x256xf32>
    %399 = arith.addf %394, %398 : vector<1x256xf32>
    %400 = arith.addf %390, %399 : vector<1x256xf32>
    %c18_154 = arith.constant 18 : index
    %401 = memref.load %arg6[%c18_154] : memref<98xf32, #tpu.memory_space<smem>>
    %c0_155 = arith.constant 0 : index
    %c36_156 = arith.constant 36 : index
    %402 = vector.load %arg11[%c0_155, %c36_156] : memref<1x358xf32, #tpu.memory_space<vmem>>, vector<1x256xf32>
    %403 = vector.broadcast %401 : f32 to vector<1x256xf32>
    %404 = arith.mulf %403, %402 : vector<1x256xf32>
    %c67_157 = arith.constant 67 : index
    %405 = memref.load %arg6[%c67_157] : memref<98xf32, #tpu.memory_space<smem>>
    %c0_158 = arith.constant 0 : index
    %c36_159 = arith.constant 36 : index
    %406 = vector.load %arg12[%c0_158, %c36_159] : memref<1x358xf32, #tpu.memory_space<vmem>>, vector<1x256xf32>
    %407 = vector.broadcast %405 : f32 to vector<1x256xf32>
    %408 = arith.mulf %407, %406 : vector<1x256xf32>
    %409 = arith.addf %404, %408 : vector<1x256xf32>
    %410 = arith.addf %400, %409 : vector<1x256xf32>
    %c25 = arith.constant 25 : index
    %411 = memref.load %arg6[%c25] : memref<98xf32, #tpu.memory_space<smem>>
    %c0_160 = arith.constant 0 : index
    %c52_161 = arith.constant 52 : index
    %412 = vector.load %arg11[%c0_160, %c52_161] : memref<1x358xf32, #tpu.memory_space<vmem>>, vector<1x256xf32>
    %413 = vector.broadcast %411 : f32 to vector<1x256xf32>
    %414 = arith.mulf %413, %412 : vector<1x256xf32>
    %c74 = arith.constant 74 : index
    %415 = memref.load %arg6[%c74] : memref<98xf32, #tpu.memory_space<smem>>
    %c0_162 = arith.constant 0 : index
    %c52_163 = arith.constant 52 : index
    %416 = vector.load %arg12[%c0_162, %c52_163] : memref<1x358xf32, #tpu.memory_space<vmem>>, vector<1x256xf32>
    %417 = vector.broadcast %415 : f32 to vector<1x256xf32>
    %418 = arith.mulf %417, %416 : vector<1x256xf32>
    %419 = arith.addf %414, %418 : vector<1x256xf32>
    %420 = arith.addf %410, %419 : vector<1x256xf32>
    %c32_164 = arith.constant 32 : index
    %421 = memref.load %arg6[%c32_164] : memref<98xf32, #tpu.memory_space<smem>>
    %c0_165 = arith.constant 0 : index
    %c68 = arith.constant 68 : index
    %422 = vector.load %arg11[%c0_165, %c68] : memref<1x358xf32, #tpu.memory_space<vmem>>, vector<1x256xf32>
    %423 = vector.broadcast %421 : f32 to vector<1x256xf32>
    %424 = arith.mulf %423, %422 : vector<1x256xf32>
    %c81_166 = arith.constant 81 : index
    %425 = memref.load %arg6[%c81_166] : memref<98xf32, #tpu.memory_space<smem>>
    %c0_167 = arith.constant 0 : index
    %c68_168 = arith.constant 68 : index
    %426 = vector.load %arg12[%c0_167, %c68_168] : memref<1x358xf32, #tpu.memory_space<vmem>>, vector<1x256xf32>
    %427 = vector.broadcast %425 : f32 to vector<1x256xf32>
    %428 = arith.mulf %427, %426 : vector<1x256xf32>
    %429 = arith.addf %424, %428 : vector<1x256xf32>
    %430 = arith.addf %420, %429 : vector<1x256xf32>
    %c39 = arith.constant 39 : index
    %431 = memref.load %arg6[%c39] : memref<98xf32, #tpu.memory_space<smem>>
    %c0_169 = arith.constant 0 : index
    %c84_170 = arith.constant 84 : index
    %432 = vector.load %arg11[%c0_169, %c84_170] : memref<1x358xf32, #tpu.memory_space<vmem>>, vector<1x256xf32>
    %433 = vector.broadcast %431 : f32 to vector<1x256xf32>
    %434 = arith.mulf %433, %432 : vector<1x256xf32>
    %c88 = arith.constant 88 : index
    %435 = memref.load %arg6[%c88] : memref<98xf32, #tpu.memory_space<smem>>
    %c0_171 = arith.constant 0 : index
    %c84_172 = arith.constant 84 : index
    %436 = vector.load %arg12[%c0_171, %c84_172] : memref<1x358xf32, #tpu.memory_space<vmem>>, vector<1x256xf32>
    %437 = vector.broadcast %435 : f32 to vector<1x256xf32>
    %438 = arith.mulf %437, %436 : vector<1x256xf32>
    %439 = arith.addf %434, %438 : vector<1x256xf32>
    %440 = arith.addf %430, %439 : vector<1x256xf32>
    %c46 = arith.constant 46 : index
    %441 = memref.load %arg6[%c46] : memref<98xf32, #tpu.memory_space<smem>>
    %c0_173 = arith.constant 0 : index
    %c100 = arith.constant 100 : index
    %442 = vector.load %arg11[%c0_173, %c100] : memref<1x358xf32, #tpu.memory_space<vmem>>, vector<1x256xf32>
    %443 = vector.broadcast %441 : f32 to vector<1x256xf32>
    %444 = arith.mulf %443, %442 : vector<1x256xf32>
    %c95 = arith.constant 95 : index
    %445 = memref.load %arg6[%c95] : memref<98xf32, #tpu.memory_space<smem>>
    %c0_174 = arith.constant 0 : index
    %c100_175 = arith.constant 100 : index
    %446 = vector.load %arg12[%c0_174, %c100_175] : memref<1x358xf32, #tpu.memory_space<vmem>>, vector<1x256xf32>
    %447 = vector.broadcast %445 : f32 to vector<1x256xf32>
    %448 = arith.mulf %447, %446 : vector<1x256xf32>
    %449 = arith.addf %444, %448 : vector<1x256xf32>
    %450 = arith.addf %440, %449 : vector<1x256xf32>
    %c-1_i32 = arith.constant -1 : i32
    %451 = vector.broadcast %c-1_i32 : i32 to vector<1x256xi32>
    %452 = arith.cmpi sge, %62, %451 : vector<1x256xi32>
    %c14_i32 = arith.constant 14 : i32
    %453 = vector.broadcast %c14_i32 : i32 to vector<1x256xi32>
    %454 = arith.cmpi sle, %62, %453 : vector<1x256xi32>
    %455 = arith.andi %452, %454 : vector<1x256xi1>
    %cst_176 = arith.constant 0.000000e+00 : f32
    %456 = vector.broadcast %cst_176 : f32 to vector<1x256xf32>
    %457 = arith.select %455, %450, %456 : vector<1x256xi1>, vector<1x256xf32>
    %458 = arith.addf %379, %457 : vector<1x256xf32>
    %cst_177 = arith.constant 0.000000e+00 : f32
    %459 = vector.broadcast %cst_177 : f32 to vector<1x256xf32>
    %c5 = arith.constant 5 : index
    %460 = memref.load %arg6[%c5] : memref<98xf32, #tpu.memory_space<smem>>
    %c0_178 = arith.constant 0 : index
    %c5_179 = arith.constant 5 : index
    %461 = vector.load %arg11[%c0_178, %c5_179] : memref<1x358xf32, #tpu.memory_space<vmem>>, vector<1x256xf32>
    %462 = vector.broadcast %460 : f32 to vector<1x256xf32>
    %463 = arith.mulf %462, %461 : vector<1x256xf32>
    %c54 = arith.constant 54 : index
    %464 = memref.load %arg6[%c54] : memref<98xf32, #tpu.memory_space<smem>>
    %c0_180 = arith.constant 0 : index
    %c5_181 = arith.constant 5 : index
    %465 = vector.load %arg12[%c0_180, %c5_181] : memref<1x358xf32, #tpu.memory_space<vmem>>, vector<1x256xf32>
    %466 = vector.broadcast %464 : f32 to vector<1x256xf32>
    %467 = arith.mulf %466, %465 : vector<1x256xf32>
    %468 = arith.addf %463, %467 : vector<1x256xf32>
    %469 = arith.addf %459, %468 : vector<1x256xf32>
    %c12 = arith.constant 12 : index
    %470 = memref.load %arg6[%c12] : memref<98xf32, #tpu.memory_space<smem>>
    %c0_182 = arith.constant 0 : index
    %c21_183 = arith.constant 21 : index
    %471 = vector.load %arg11[%c0_182, %c21_183] : memref<1x358xf32, #tpu.memory_space<vmem>>, vector<1x256xf32>
    %472 = vector.broadcast %470 : f32 to vector<1x256xf32>
    %473 = arith.mulf %472, %471 : vector<1x256xf32>
    %c61 = arith.constant 61 : index
    %474 = memref.load %arg6[%c61] : memref<98xf32, #tpu.memory_space<smem>>
    %c0_184 = arith.constant 0 : index
    %c21_185 = arith.constant 21 : index
    %475 = vector.load %arg12[%c0_184, %c21_185] : memref<1x358xf32, #tpu.memory_space<vmem>>, vector<1x256xf32>
    %476 = vector.broadcast %474 : f32 to vector<1x256xf32>
    %477 = arith.mulf %476, %475 : vector<1x256xf32>
    %478 = arith.addf %473, %477 : vector<1x256xf32>
    %479 = arith.addf %469, %478 : vector<1x256xf32>
    %c19_186 = arith.constant 19 : index
    %480 = memref.load %arg6[%c19_186] : memref<98xf32, #tpu.memory_space<smem>>
    %c0_187 = arith.constant 0 : index
    %c37_188 = arith.constant 37 : index
    %481 = vector.load %arg11[%c0_187, %c37_188] : memref<1x358xf32, #tpu.memory_space<vmem>>, vector<1x256xf32>
    %482 = vector.broadcast %480 : f32 to vector<1x256xf32>
    %483 = arith.mulf %482, %481 : vector<1x256xf32>
    %c68_189 = arith.constant 68 : index
    %484 = memref.load %arg6[%c68_189] : memref<98xf32, #tpu.memory_space<smem>>
    %c0_190 = arith.constant 0 : index
    %c37_191 = arith.constant 37 : index
    %485 = vector.load %arg12[%c0_190, %c37_191] : memref<1x358xf32, #tpu.memory_space<vmem>>, vector<1x256xf32>
    %486 = vector.broadcast %484 : f32 to vector<1x256xf32>
    %487 = arith.mulf %486, %485 : vector<1x256xf32>
    %488 = arith.addf %483, %487 : vector<1x256xf32>
    %489 = arith.addf %479, %488 : vector<1x256xf32>
    %c26 = arith.constant 26 : index
    %490 = memref.load %arg6[%c26] : memref<98xf32, #tpu.memory_space<smem>>
    %c0_192 = arith.constant 0 : index
    %c53_193 = arith.constant 53 : index
    %491 = vector.load %arg11[%c0_192, %c53_193] : memref<1x358xf32, #tpu.memory_space<vmem>>, vector<1x256xf32>
    %492 = vector.broadcast %490 : f32 to vector<1x256xf32>
    %493 = arith.mulf %492, %491 : vector<1x256xf32>
    %c75 = arith.constant 75 : index
    %494 = memref.load %arg6[%c75] : memref<98xf32, #tpu.memory_space<smem>>
    %c0_194 = arith.constant 0 : index
    %c53_195 = arith.constant 53 : index
    %495 = vector.load %arg12[%c0_194, %c53_195] : memref<1x358xf32, #tpu.memory_space<vmem>>, vector<1x256xf32>
    %496 = vector.broadcast %494 : f32 to vector<1x256xf32>
    %497 = arith.mulf %496, %495 : vector<1x256xf32>
    %498 = arith.addf %493, %497 : vector<1x256xf32>
    %499 = arith.addf %489, %498 : vector<1x256xf32>
    %c33_196 = arith.constant 33 : index
    %500 = memref.load %arg6[%c33_196] : memref<98xf32, #tpu.memory_space<smem>>
    %c0_197 = arith.constant 0 : index
    %c69 = arith.constant 69 : index
    %501 = vector.load %arg11[%c0_197, %c69] : memref<1x358xf32, #tpu.memory_space<vmem>>, vector<1x256xf32>
    %502 = vector.broadcast %500 : f32 to vector<1x256xf32>
    %503 = arith.mulf %502, %501 : vector<1x256xf32>
    %c82_198 = arith.constant 82 : index
    %504 = memref.load %arg6[%c82_198] : memref<98xf32, #tpu.memory_space<smem>>
    %c0_199 = arith.constant 0 : index
    %c69_200 = arith.constant 69 : index
    %505 = vector.load %arg12[%c0_199, %c69_200] : memref<1x358xf32, #tpu.memory_space<vmem>>, vector<1x256xf32>
    %506 = vector.broadcast %504 : f32 to vector<1x256xf32>
    %507 = arith.mulf %506, %505 : vector<1x256xf32>
    %508 = arith.addf %503, %507 : vector<1x256xf32>
    %509 = arith.addf %499, %508 : vector<1x256xf32>
    %c40 = arith.constant 40 : index
    %510 = memref.load %arg6[%c40] : memref<98xf32, #tpu.memory_space<smem>>
    %c0_201 = arith.constant 0 : index
    %c85_202 = arith.constant 85 : index
    %511 = vector.load %arg11[%c0_201, %c85_202] : memref<1x358xf32, #tpu.memory_space<vmem>>, vector<1x256xf32>
    %512 = vector.broadcast %510 : f32 to vector<1x256xf32>
    %513 = arith.mulf %512, %511 : vector<1x256xf32>
    %c89 = arith.constant 89 : index
    %514 = memref.load %arg6[%c89] : memref<98xf32, #tpu.memory_space<smem>>
    %c0_203 = arith.constant 0 : index
    %c85_204 = arith.constant 85 : index
    %515 = vector.load %arg12[%c0_203, %c85_204] : memref<1x358xf32, #tpu.memory_space<vmem>>, vector<1x256xf32>
    %516 = vector.broadcast %514 : f32 to vector<1x256xf32>
    %517 = arith.mulf %516, %515 : vector<1x256xf32>
    %518 = arith.addf %513, %517 : vector<1x256xf32>
    %519 = arith.addf %509, %518 : vector<1x256xf32>
    %c47 = arith.constant 47 : index
    %520 = memref.load %arg6[%c47] : memref<98xf32, #tpu.memory_space<smem>>
    %c0_205 = arith.constant 0 : index
    %c101 = arith.constant 101 : index
    %521 = vector.load %arg11[%c0_205, %c101] : memref<1x358xf32, #tpu.memory_space<vmem>>, vector<1x256xf32>
    %522 = vector.broadcast %520 : f32 to vector<1x256xf32>
    %523 = arith.mulf %522, %521 : vector<1x256xf32>
    %c96_206 = arith.constant 96 : index
    %524 = memref.load %arg6[%c96_206] : memref<98xf32, #tpu.memory_space<smem>>
    %c0_207 = arith.constant 0 : index
    %c101_208 = arith.constant 101 : index
    %525 = vector.load %arg12[%c0_207, %c101_208] : memref<1x358xf32, #tpu.memory_space<vmem>>, vector<1x256xf32>
    %526 = vector.broadcast %524 : f32 to vector<1x256xf32>
    %527 = arith.mulf %526, %525 : vector<1x256xf32>
    %528 = arith.addf %523, %527 : vector<1x256xf32>
    %529 = arith.addf %519, %528 : vector<1x256xf32>
    %c-2_i32 = arith.constant -2 : i32
    %530 = vector.broadcast %c-2_i32 : i32 to vector<1x256xi32>
    %531 = arith.cmpi sge, %62, %530 : vector<1x256xi32>
    %c13_i32 = arith.constant 13 : i32
    %532 = vector.broadcast %c13_i32 : i32 to vector<1x256xi32>
    %533 = arith.cmpi sle, %62, %532 : vector<1x256xi32>
    %534 = arith.andi %531, %533 : vector<1x256xi1>
    %cst_209 = arith.constant 0.000000e+00 : f32
    %535 = vector.broadcast %cst_209 : f32 to vector<1x256xf32>
    %536 = arith.select %534, %529, %535 : vector<1x256xi1>, vector<1x256xf32>
    %537 = arith.addf %458, %536 : vector<1x256xf32>
    %cst_210 = arith.constant 0.000000e+00 : f32
    %538 = vector.broadcast %cst_210 : f32 to vector<1x256xf32>
    %c6 = arith.constant 6 : index
    %539 = memref.load %arg6[%c6] : memref<98xf32, #tpu.memory_space<smem>>
    %c0_211 = arith.constant 0 : index
    %c6_212 = arith.constant 6 : index
    %540 = vector.load %arg11[%c0_211, %c6_212] : memref<1x358xf32, #tpu.memory_space<vmem>>, vector<1x256xf32>
    %541 = vector.broadcast %539 : f32 to vector<1x256xf32>
    %542 = arith.mulf %541, %540 : vector<1x256xf32>
    %c55 = arith.constant 55 : index
    %543 = memref.load %arg6[%c55] : memref<98xf32, #tpu.memory_space<smem>>
    %c0_213 = arith.constant 0 : index
    %c6_214 = arith.constant 6 : index
    %544 = vector.load %arg12[%c0_213, %c6_214] : memref<1x358xf32, #tpu.memory_space<vmem>>, vector<1x256xf32>
    %545 = vector.broadcast %543 : f32 to vector<1x256xf32>
    %546 = arith.mulf %545, %544 : vector<1x256xf32>
    %547 = arith.addf %542, %546 : vector<1x256xf32>
    %548 = arith.addf %538, %547 : vector<1x256xf32>
    %c13 = arith.constant 13 : index
    %549 = memref.load %arg6[%c13] : memref<98xf32, #tpu.memory_space<smem>>
    %c0_215 = arith.constant 0 : index
    %c22_216 = arith.constant 22 : index
    %550 = vector.load %arg11[%c0_215, %c22_216] : memref<1x358xf32, #tpu.memory_space<vmem>>, vector<1x256xf32>
    %551 = vector.broadcast %549 : f32 to vector<1x256xf32>
    %552 = arith.mulf %551, %550 : vector<1x256xf32>
    %c62 = arith.constant 62 : index
    %553 = memref.load %arg6[%c62] : memref<98xf32, #tpu.memory_space<smem>>
    %c0_217 = arith.constant 0 : index
    %c22_218 = arith.constant 22 : index
    %554 = vector.load %arg12[%c0_217, %c22_218] : memref<1x358xf32, #tpu.memory_space<vmem>>, vector<1x256xf32>
    %555 = vector.broadcast %553 : f32 to vector<1x256xf32>
    %556 = arith.mulf %555, %554 : vector<1x256xf32>
    %557 = arith.addf %552, %556 : vector<1x256xf32>
    %558 = arith.addf %548, %557 : vector<1x256xf32>
    %c20_219 = arith.constant 20 : index
    %559 = memref.load %arg6[%c20_219] : memref<98xf32, #tpu.memory_space<smem>>
    %c0_220 = arith.constant 0 : index
    %c38_221 = arith.constant 38 : index
    %560 = vector.load %arg11[%c0_220, %c38_221] : memref<1x358xf32, #tpu.memory_space<vmem>>, vector<1x256xf32>
    %561 = vector.broadcast %559 : f32 to vector<1x256xf32>
    %562 = arith.mulf %561, %560 : vector<1x256xf32>
    %c69_222 = arith.constant 69 : index
    %563 = memref.load %arg6[%c69_222] : memref<98xf32, #tpu.memory_space<smem>>
    %c0_223 = arith.constant 0 : index
    %c38_224 = arith.constant 38 : index
    %564 = vector.load %arg12[%c0_223, %c38_224] : memref<1x358xf32, #tpu.memory_space<vmem>>, vector<1x256xf32>
    %565 = vector.broadcast %563 : f32 to vector<1x256xf32>
    %566 = arith.mulf %565, %564 : vector<1x256xf32>
    %567 = arith.addf %562, %566 : vector<1x256xf32>
    %568 = arith.addf %558, %567 : vector<1x256xf32>
    %c27 = arith.constant 27 : index
    %569 = memref.load %arg6[%c27] : memref<98xf32, #tpu.memory_space<smem>>
    %c0_225 = arith.constant 0 : index
    %c54_226 = arith.constant 54 : index
    %570 = vector.load %arg11[%c0_225, %c54_226] : memref<1x358xf32, #tpu.memory_space<vmem>>, vector<1x256xf32>
    %571 = vector.broadcast %569 : f32 to vector<1x256xf32>
    %572 = arith.mulf %571, %570 : vector<1x256xf32>
    %c76 = arith.constant 76 : index
    %573 = memref.load %arg6[%c76] : memref<98xf32, #tpu.memory_space<smem>>
    %c0_227 = arith.constant 0 : index
    %c54_228 = arith.constant 54 : index
    %574 = vector.load %arg12[%c0_227, %c54_228] : memref<1x358xf32, #tpu.memory_space<vmem>>, vector<1x256xf32>
    %575 = vector.broadcast %573 : f32 to vector<1x256xf32>
    %576 = arith.mulf %575, %574 : vector<1x256xf32>
    %577 = arith.addf %572, %576 : vector<1x256xf32>
    %578 = arith.addf %568, %577 : vector<1x256xf32>
    %c34_229 = arith.constant 34 : index
    %579 = memref.load %arg6[%c34_229] : memref<98xf32, #tpu.memory_space<smem>>
    %c0_230 = arith.constant 0 : index
    %c70_231 = arith.constant 70 : index
    %580 = vector.load %arg11[%c0_230, %c70_231] : memref<1x358xf32, #tpu.memory_space<vmem>>, vector<1x256xf32>
    %581 = vector.broadcast %579 : f32 to vector<1x256xf32>
    %582 = arith.mulf %581, %580 : vector<1x256xf32>
    %c83_232 = arith.constant 83 : index
    %583 = memref.load %arg6[%c83_232] : memref<98xf32, #tpu.memory_space<smem>>
    %c0_233 = arith.constant 0 : index
    %c70_234 = arith.constant 70 : index
    %584 = vector.load %arg12[%c0_233, %c70_234] : memref<1x358xf32, #tpu.memory_space<vmem>>, vector<1x256xf32>
    %585 = vector.broadcast %583 : f32 to vector<1x256xf32>
    %586 = arith.mulf %585, %584 : vector<1x256xf32>
    %587 = arith.addf %582, %586 : vector<1x256xf32>
    %588 = arith.addf %578, %587 : vector<1x256xf32>
    %c41 = arith.constant 41 : index
    %589 = memref.load %arg6[%c41] : memref<98xf32, #tpu.memory_space<smem>>
    %c0_235 = arith.constant 0 : index
    %c86_236 = arith.constant 86 : index
    %590 = vector.load %arg11[%c0_235, %c86_236] : memref<1x358xf32, #tpu.memory_space<vmem>>, vector<1x256xf32>
    %591 = vector.broadcast %589 : f32 to vector<1x256xf32>
    %592 = arith.mulf %591, %590 : vector<1x256xf32>
    %c90 = arith.constant 90 : index
    %593 = memref.load %arg6[%c90] : memref<98xf32, #tpu.memory_space<smem>>
    %c0_237 = arith.constant 0 : index
    %c86_238 = arith.constant 86 : index
    %594 = vector.load %arg12[%c0_237, %c86_238] : memref<1x358xf32, #tpu.memory_space<vmem>>, vector<1x256xf32>
    %595 = vector.broadcast %593 : f32 to vector<1x256xf32>
    %596 = arith.mulf %595, %594 : vector<1x256xf32>
    %597 = arith.addf %592, %596 : vector<1x256xf32>
    %598 = arith.addf %588, %597 : vector<1x256xf32>
    %c48_239 = arith.constant 48 : index
    %599 = memref.load %arg6[%c48_239] : memref<98xf32, #tpu.memory_space<smem>>
    %c0_240 = arith.constant 0 : index
    %c102 = arith.constant 102 : index
    %600 = vector.load %arg11[%c0_240, %c102] : memref<1x358xf32, #tpu.memory_space<vmem>>, vector<1x256xf32>
    %601 = vector.broadcast %599 : f32 to vector<1x256xf32>
    %602 = arith.mulf %601, %600 : vector<1x256xf32>
    %c97_241 = arith.constant 97 : index
    %603 = memref.load %arg6[%c97_241] : memref<98xf32, #tpu.memory_space<smem>>
    %c0_242 = arith.constant 0 : index
    %c102_243 = arith.constant 102 : index
    %604 = vector.load %arg12[%c0_242, %c102_243] : memref<1x358xf32, #tpu.memory_space<vmem>>, vector<1x256xf32>
    %605 = vector.broadcast %603 : f32 to vector<1x256xf32>
    %606 = arith.mulf %605, %604 : vector<1x256xf32>
    %607 = arith.addf %602, %606 : vector<1x256xf32>
    %608 = arith.addf %598, %607 : vector<1x256xf32>
    %c-3_i32 = arith.constant -3 : i32
    %609 = vector.broadcast %c-3_i32 : i32 to vector<1x256xi32>
    %610 = arith.cmpi sge, %62, %609 : vector<1x256xi32>
    %c12_i32 = arith.constant 12 : i32
    %611 = vector.broadcast %c12_i32 : i32 to vector<1x256xi32>
    %612 = arith.cmpi sle, %62, %611 : vector<1x256xi32>
    %613 = arith.andi %610, %612 : vector<1x256xi1>
    %cst_244 = arith.constant 0.000000e+00 : f32
    %614 = vector.broadcast %cst_244 : f32 to vector<1x256xf32>
    %615 = arith.select %613, %608, %614 : vector<1x256xi1>, vector<1x256xf32>
    %616 = arith.addf %537, %615 : vector<1x256xf32>
    %c0_245 = arith.constant 0 : index
    %617 = memref.load %arg7[%c0_245] : memref<1xf32, #tpu.memory_space<smem>>
    %618 = vector.broadcast %617 : f32 to vector<1x256xf32>
    %619 = arith.addf %616, %618 : vector<1x256xf32>
    %620 = arith.negf %619 : vector<1x256xf32>
    %621 = math.exp %620 : vector<1x256xf32>
    %cst_246 = arith.constant 1.000000e+00 : f32
    %622 = vector.broadcast %cst_246 : f32 to vector<1x256xf32>
    %623 = arith.addf %622, %621 : vector<1x256xf32>
    %624 = arith.divf %622, %623 : vector<1x256xf32>
    %625 = arith.truncf %624 : vector<1x256xf32> to vector<1x256xbf16>
    %626 = vector.broadcast %625 : vector<1x256xbf16> to vector<4x256xbf16>
    %627 = arith.mulf %30, %626 : vector<4x256xbf16>
    %628 = arith.addf %627, %1 : vector<4x256xbf16>
    %c0_247 = arith.constant 0 : index
    %c0_248 = arith.constant 0 : index
    %629 = vector.load %arg8[%c0_247, %c0_248] : memref<8x4xbf16, #tpu.memory_space<vmem>>, vector<8x4xbf16>
    %cst_249 = arith.constant dense<0.000000e+00> : vector<8x256xf32>
    %630 = tpu.matmul %629, %628, %cst_249 {dimension_numbers = #tpu.dot_dimension_numbers<[1], [0], [0], [1], [0, 0, 1, 1], [], []>} : vector<8x4xbf16>, vector<4x256xbf16>, vector<8x256xf32> -> vector<8x256xf32>
    %c0_250 = arith.constant 0 : index
    %c0_251 = arith.constant 0 : index
    %631 = vector.load %arg9[%c0_250, %c0_251] : memref<8x1xf32, #tpu.memory_space<vmem>>, vector<8x1xf32>
    %632 = vector.broadcast %631 : vector<8x1xf32> to vector<8x256xf32>
    %633 = arith.addf %630, %632 : vector<8x256xf32>
    %634 = arith.negf %633 : vector<8x256xf32>
    %635 = math.exp %634 : vector<8x256xf32>
    %cst_252 = arith.constant 1.000000e+00 : f32
    %636 = vector.broadcast %cst_252 : f32 to vector<8x256xf32>
    %637 = arith.addf %636, %635 : vector<8x256xf32>
    %638 = arith.divf %636, %637 : vector<8x256xf32>
    %639 = arith.mulf %633, %638 : vector<8x256xf32>
    %c0_253 = arith.constant 0 : index
    %c0_254 = arith.constant 0 : index
    %c0_255 = arith.constant 0 : index
    %640 = vector.load %arg10[%c0_253, %c0_254, %c0_255] : memref<1x8x256xf32, #tpu.memory_space<vmem>>, vector<1x8x256xf32>
    %641 = vector.shape_cast %640 : vector<1x8x256xf32> to vector<8x256xf32>
    %642 = vector.shape_cast %639 : vector<8x256xf32> to vector<1x8x256xf32>
    tpu.vector_store %arg10[%c0_253, %c0_254, %c0_255], %642 {strides = array<i32>} : memref<1x8x256xf32, #tpu.memory_space<vmem>>, vector<1x8x256xf32>,
    return
  }
  func.func @transform_0(%arg0: i32) -> (i32, i32, i32) {
    %c0_i32 = arith.constant 0 : i32
    %c0_i32_0 = arith.constant 0 : i32
    %c0_i32_1 = arith.constant 0 : i32
    return %arg0, %c0_i32, %c0_i32_0 : i32, i32, i32
  }
  func.func @transform_1(%arg0: i32) -> (i32, i32) {
    %c0_i32 = arith.constant 0 : i32
    %c0_i32_0 = arith.constant 0 : i32
    %c0_i32_1 = arith.constant 0 : i32
    return %c0_i32, %c0_i32_0 : i32, i32
  }
  func.func @transform_2(%arg0: i32) -> (i32, i32) {
    %c0_i32 = arith.constant 0 : i32
    %c0_i32_0 = arith.constant 0 : i32
    %c0_i32_1 = arith.constant 0 : i32
    return %c0_i32, %c0_i32_0 : i32, i32
  }
  func.func @transform_3(%arg0: i32) -> (i32, i32) {
    %c0_i32 = arith.constant 0 : i32
    %c0_i32_0 = arith.constant 0 : i32
    %c0_i32_1 = arith.constant 0 : i32
    return %c0_i32, %c0_i32_0 : i32, i32
  }
  func.func @transform_4(%arg0: i32) -> (i32, i32) {
    %c0_i32 = arith.constant 0 : i32
    %c0_i32_0 = arith.constant 0 : i32
    %c0_i32_1 = arith.constant 0 : i32
    return %c0_i32, %c0_i32_0 : i32, i32
  }
  func.func @transform_5(%arg0: i32) -> i32 {
    %c0_i32 = arith.constant 0 : i32
    %c0_i32_0 = arith.constant 0 : i32
    return %c0_i32 : i32
  }
  func.func @transform_6(%arg0: i32) -> i32 {
    %c0_i32 = arith.constant 0 : i32
    %c0_i32_0 = arith.constant 0 : i32
    return %c0_i32 : i32
  }
  func.func @transform_7(%arg0: i32) -> (i32, i32) {
    %c0_i32 = arith.constant 0 : i32
    %c0_i32_0 = arith.constant 0 : i32
    %c0_i32_1 = arith.constant 0 : i32
    return %c0_i32, %c0_i32_0 : i32, i32
  }
  func.func @transform_8(%arg0: i32) -> (i32, i32) {
    %c0_i32 = arith.constant 0 : i32
    %c0_i32_0 = arith.constant 0 : i32
    %c0_i32_1 = arith.constant 0 : i32
    return %c0_i32, %c0_i32_0 : i32, i32
  }
  func.func @transform_9(%arg0: i32) -> (i32, i32, i32) {
    %c0_i32 = arith.constant 0 : i32
    %c0_i32_0 = arith.constant 0 : i32
    %c0_i32_1 = arith.constant 0 : i32
    return %arg0, %c0_i32, %c0_i32_0 : i32, i32, i32
  }
}

</mosaic_0001>

<bundles_post_ra>
// kernel: tpu_custom_call.1
= control target key start
LH: loop header
LB: loop body
LE: loop exit
PB: predicated region body
PF: predicated region fallthrough
CT: control target
= control target key end

     0   :  { %s3260_s0 = inlined_call_operand.vmem [shape: bf16[2,4,256], index: 0, kind: input, shape index: {}]   ;;  %s3261_s1 = inlined_call_operand.vmem [shape: f32[16,4], index: 1, kind: input, shape index: {}]   ;;  %s3262_s2 = inlined_call_operand.vmem [shape: f32[16,1], index: 2, kind: input, shape index: {}]   ;;  %s3263_s3 = inlined_call_operand.vmem [shape: f32[4,16], index: 3, kind: input, shape index: {}]   ;;  %s3264_s4 = inlined_call_operand.vmem [shape: f32[4,1], index: 4, kind: input, shape index: {}]   ;;  %s3265_s5 = inlined_call_operand.vmem [shape: f32[98], index: 5, kind: input, shape index: {}]   ;;  %s3266_s6 = inlined_call_operand.<no memory space> [shape: f32[1], index: 6, kind: input, shape index: {}]   ;;  %s3267_s7 = inlined_call_operand.vmem [shape: bf16[8,4], index: 7, kind: input, shape index: {}]   ;;  %s3268_s8 = inlined_call_operand.vmem [shape: f32[8,1], index: 8, kind: input, shape index: {}]   ;;  %s3269_s9 = inlined_call_operand.hbm [shape: f32[2,8,256], index: 9, kind: output, shape index: {}]  }
   0x1   :  { %3282 = sst [smem:[#allocation21_spill]] %s3260_s0 }
   0x2   :  { %3283 = sst [smem:[#allocation22_spill]] %s3261_s1 }
   0x3   :  { %3284 = sst [smem:[#allocation23_spill]] %s3262_s2 }
   0x4   :  { %3285 = sst [smem:[#allocation24_spill]] %s3263_s3 }
   0x5   :  { %3286 = sst [smem:[#allocation25_spill]] %s3264_s4 }
   0x6   :  { %3287 = sst [smem:[#allocation26_spill]] %s3265_s5 }
   0x7   :  { %3288 = sst [smem:[#allocation27_spill]] %s3267_s7 }
   0x8   :  { %3289 = sst [smem:[#allocation28_spill]] %s3268_s8 }
   0x9   :  { %3290 = sst [smem:[#allocation29_spill]] %s3269_s9 }
   0xa   :  { %14 = sst [smem:[#allocation4]] %s3266_s6 }
   0xb   :  { %15 = vsyncpa [#allocation7], 0 }
   0xc   :  { %16 = vsyncpa [#allocation6], 0 }
   0xd   :  { %18 = vsyncpa [#allocation6 + $0x1], 0  ;;  %s2318_s11 = smov 0   ;;  %s2320_s12 = smov 0  }
   0xe   :  { %s2322_s13 = smov 0   ;;  %s2324_s14 = smov 0  }
   0xf LB: > { %3291 = sst [smem:[#allocation11_spill]] %s2228_s11  ;;  %s2339_s6 = sadd.s32 4294967295, %s2240_s14   ;;  %s2240_s14 = sphi %s2324_s14, %s3325_s14   ;;  %s2236_s13 = sphi %s2322_s13, %s3328_s13   ;;  %s2232_s12 = sphi %s2320_s12, %s3327_s12   ;;  %s2228_s11 = sphi %s2318_s11, %s3326_s11  }
  0x10   : > { %3292 = sst [smem:[#allocation12_spill]] %s2232_s12  ;;  %s1886_s15 = sadd.s32 4294967294, %s2240_s14  }
  0x11   : > { %3293 = sst [smem:[#allocation13_spill]] %s2236_s13  ;;  %s2343_s16 = sadd.s32 1, %s2240_s14  }
  0x12   : > { %3294 = sst [smem:[#allocation14_spill]] %s2240_s14  ;;  %s225_s17 = sadd.s32 1, %s2236_s13 }
  0x13   : > { %3295 = sst [smem:[#allocation15_spill]] %s2339_s6  ;;  %s222_s18 = ssub.s32 %s2240_s14, %s2343_s16 }
  0x14   : > { %3296 = sst [smem:[#allocation16_spill]] %s2343_s16  ;;  %p235_p0 = scmp.ne.s32.totalorder %s2236_s13, %s2232_s12 }
  0x15   : > { %p223_p1 = scmp.eq.s32.totalorder %s222_s18, 0  ;;  %p236_p2 = scmp.eq.s32.totalorder %s2339_s6, 1 }
  0x16   : > { %p241_p3 = scmp.ne.s32.totalorder %s2232_s12, %s2228_s11  ;;  %p242_p4 = scmp.eq.s32.totalorder %s1886_s15, 1 }
  0x17   : > { %s2354_s19 = scalar_select %p223_p1, %s2236_s13, %s225_s17  }
  0x18   : > { %p2356_p5 = por %p236_p2, %p235_p0  ;;  %p2360_p6 = por %p242_p4, %p241_p3 }
  0x19   : > { %3297 = sst [smem:[#allocation17_spill]] %s2354_s19  ;;  %p1887_p7 = scmp.ge.s32.totalorder %s2240_s14, 1 }
  0x1a   : > { %s3298_s20 = scalar_select %p2356_p5, 1, 0 }
  0x1b   : > { %s3300_s21 = scalar_select %p2360_p6, 1, 0 }
  0x1c   : > { %3299 = sst [smem:[#allocation18_spill]] %s3298_s20  ;;  %p249_p8 = scmp.lt.s32.totalorder %s2240_s14, 3 }
  0x1d   : > { %3301 = sst [smem:[#allocation19_spill]] %s3300_s21  ;;  %p2071_p9 = scmp.eq.s32.totalorder %s2339_s6, 0 }
  0x1e   : > { %p2367_p10 = pnand %p1887_p7, %p249_p8  ;;  %s3303_s5 = sld [smem:[#allocation26_spill]] }
  0x20   : > { %p2063_p11 = pneg %p2367_p10 }
  0x22   : > { %p2064_p12 = pnand %p2071_p9, %p2063_p11 }
  0x24   : > { %s274_s25 = sshll.u32 %s3303_s5, 4  ;;  %p2161_p0 = pneg %p2064_p12  ;;  %s275_s25 = int_to_ptr.vmem [resolvable:$true] %s274_s25 }
  0x25   : > { %s2159_s26 = scalar_lea.vmem %s275_s25, 16  ;;  %p2167_p3 = scmp.lt.s32.totalorder %s275_s25, %s275_s25 }
  0x26   : > { %p2160_p13 = scmp.ne.s32.totalorder %s275_s25, %s2159_s26  ;;  %p2168_p4 = scmp.lt.s32.totalorder %s2159_s26, %s2159_s26 }
  0x28   : > { %p2162_p1 = pnand %p2161_p0, %p2160_p13  ;;  %p2169_p7 = por %p2168_p4, %p2167_p3 }
  0x2a   : > { %p2163_p2 = pneg %p2162_p1 }
  0x2c   : > { %p2170_p8 = pnand %p2169_p7, %p2163_p2 }
  0x2e   : > { %2173 = shalt.err (!%p2170_p8)
}
  0x2f   : > { %s2242_s27 = smov [#allocation5]   ;;  %304 = sbr.rel (%p2367_p10) target bundleno = 1915 (0x77b), region = 56 }
  0x30   : > { %2066 = dma.vmem_to_smem (!%p2064_p12), %s275_s25, 16, %s2242_s27, [#allocation7]  }
  0x36   : > { %2219 = dma.done.wait (%p2071_p9), [#allocation7], 16  }
  0x37   : > { %2221 = vsyncadd (%p2071_p9), [#allocation7], 4294967280 }
  0x38   : > { %310 = sfence }
  0x39   : > { %p341_p11 = scmp.lt.s32.totalorder %s2339_s6, 1  ;;  %v354_v0 = vlaneseq  ;;  %v2243_v1 = vmov 1065369472   ;;  %v2244_v2 = vmov 1983009808   ;;  %s3304_s0 = sld [smem:[#allocation21_spill]] }
  0x3a   : > { %2014 = vmatprep.subr.bf16.mxu0 %v2243_v1  ;;  %v352_v3 = vunpack.c.l.s4 %v2244_v2  ;;  %s3306_s1 = sld [smem:[#allocation22_spill]]  ;;  %vm416_vm0 = vcmask 31744   ;;  %s3307_s2 = sld [smem:[#allocation23_spill]]  ;;  %v2245_v12 = vmov 0   ;;  %vm423_vm1 = vcmask 1043456  }
  0x3b   : > { %2015 = vmatpush3.bf16.msra.mxu0 %v2243_v1  ;;  %s342_s28 = scalar_select %p341_p11, %s2339_s6, 1  ;;  %v2389_v4 = vshrl.u32 %v354_v0, 7  ;;  %2128 = vset.pattern.permute.xlu0 %v2245_v12  ;;  %v2246_v21 = vmov 0.0|0.0   ;;  %vm2247_vm2 = vmmov 0   ;;  %v2248_v22 = vmov 0.0  }
  0x3c   : > { %2016 = vmatprep.subr.bf16.mxu0 %v2243_v1  ;;  %v353_v5 = vunpack.c.0.s8 %v352_v3  ;;  %2129 = vset.pattern.permute.xlu1 %v2245_v12  ;;  %s3308_s4 = sld [smem:[#allocation25_spill]]  ;;  %s3309_s3 = sld [smem:[#allocation24_spill]]  ;;  %vm523_vm3 = vcmask 130048   ;;  %vm709_vm4 = vcmp.lt.s32.totalorder %v354_v0, 51  ;;  %vm2443_vm5 = vcmp.ge.s32.totalorder %v354_v0, 51 }
  0x3d   : > { %s2012_s29 = sshll.u32 %s342_s28, 2  ;;  %vm713_vm6 = vcmp.lt.s32.totalorder %v354_v0, 102  ;;  %711 = vst.msk [vmem:[#allocation2] sm:$0x1] %vm709_vm4, %v2248_v22  ;;  %742 = vst.msk [vmem:[#allocation3] sm:$0x1] %vm709_vm4, %v2248_v22 }
  0x3e   : > { %v2398_v6 = vsub.s32 %v353_v5, %v2389_v4  ;;  %vm714_vm7 = vmand %vm2443_vm5, %vm713_vm6  ;;  %v2249_v52 = vmov 269488144   ;;  %vm627_vm8 = vcmask 1041408   ;;  %s2251_s17 = smov 51   ;;  %vm2465_vm9 = vcmp.lt.s32.totalorder %v354_v0, 307  ;;  %s2479_s18 = sld [smem:[#allocation5 + $0xf]] }
  0x3f   : > { %s2395_s15 = scalar_lea.vmem %s3304_s0, %s2012_s29  ;;  %2017 = vmatpush3.bf16.msra.mxu0 %v2243_v1  ;;  %715 = vst.msk [vmem:[#allocation2 + $0x2] sm:$0x1] %vm714_vm7, %v2248_v22  ;;  %743 = vst.msk [vmem:[#allocation3 + $0x2] sm:$0x1] %vm714_vm7, %v2248_v22  ;;  %v610_v53 = vunpack.c.l.s4 %v2249_v52  ;;  %vm736_vm10 = vcmask 416768   ;;  %s2481_s22 = sld [smem:[#allocation5 + $0x8]] }
  0x40   : > { %3305 = sst [smem:[#allocation20_spill]] %s2395_s15  ;;  %v2402_v7 = vld [vmem:[%s2395_s15] sm:$0xf]  ;;  %2018 = vmatprep.subr.bf16.mxu0 %v2243_v1  ;;  %v405_v13 = vld [vmem:[%s3307_s2 + $0x8] sm:$0xff]  ;;  %vm740_vm11 = vmand %vm2443_vm5, %vm2465_vm9  ;;  %s2483_s23 = sld [smem:[#allocation5 + $0x16]]  ;;  %vm817_vm12 = vcmask 916480  }
  0x41   : > { %v357_v8 = vrot.slane %v2402_v7, %v2398_v6  ;;  %v402_v10 = vld [vmem:[%s3306_s1] sm:$0xff]  ;;  %v403_v20 = vld [vmem:[%s3306_s1 + $0x8] sm:$0xff]  ;;  %v611_v54 = vunpack.c.0.s8 %v610_v53  ;;  %s2485_s24 = sld [smem:[#allocation5 + $0x9]]  ;;  %s2487_s25 = sld [smem:[#allocation5 + $0xa]]  ;;  %vm832_vm13 = vcmask 785408   ;;  %vm847_vm14 = vcmask 654336  }
  0x42   : > { %2044 = vmatprep.mubr.msk.f32.mxu1 %vm416_vm0, %v402_v10  ;;  %v404_v11 = vld [vmem:[%s3307_s2] sm:$0xff]  ;;  %s2489_s26 = sld [smem:[#allocation5 + $0x10]]  ;;  %s2491_s27 = sld [smem:[#allocation5 + $0x17]]  ;;  %vm862_vm15 = vcmask 523264   ;;  %vm1160_vm4 = vcmask 1031168  }
  0x43   : > { %v358_v9 = vcombine.high %v357_v8, %v357_v8  ;;  %2019 = vmatpush3.bf16.msra.mxu0 %v2243_v1  ;;  %408 = vperm.xlu0 %2128, %v404_v11   ;;  %v517_v23 = vld [vmem:[%s3308_s4] sm:$0xf]  ;;  %v614_v55 = vsub.s32 %v611_v54, %v2389_v4  ;;  %s2493_s28 = sld [smem:[#allocation5 + $0x1d]]  ;;  %s2495_s29 = sld [smem:[#allocation5 + $0x11]] }
  0x44   : > { %2020 = vmatprep.subr.bf16.mxu0 %v2243_v1  ;;  %520 = vperm.xlu1 %2129, %v517_v23   ;;  %v516_v41 = vld [vmem:[%s3309_s3] sm:$0xf]  ;;  %s2497_s30 = sld [smem:[#allocation5 + $0xb]]  ;;  %s2499_s10 = sld [smem:[#allocation5 + $0x1e]] }
  0x45   : > { %393 = vmatprep.mubr.bf16.mxu0 %v358_v9  ;;  %s2503_s0 = sld [smem:[#allocation5 + $0xc]]  ;;  %s2505_s1 = sld [smem:[#allocation5 + $0x12]] }
  0x46   : > { %s2507_s2 = sld [smem:[#allocation5 + $0x2f]]  ;;  %s2509_s3 = sld [smem:[#allocation5 + $0x22]] }
  0x47   : > { %2021 = vmatpush3.bf16.msra.mxu0 %v2243_v1  ;;  %413 = vperm.xlu0 %2128, %v405_v13   ;;  %s2511_s4 = sld [smem:[#allocation5 + $0x30]]  ;;  %s2513_s5 = sld [smem:[#allocation5 + $0x29]] }
  0x48   : > { %2022 = vmatprep.subr.bf16.mxu0 %v2243_v1  ;;  %s2515_s19 = sld [smem:[#allocation5 + $0xe]]  ;;  %s2517_s13 = sld [smem:[#allocation5 + $0x7]]  ;;  %v1066_v52 = vstv %s2489_s26  ;;  %v1080_v53 = vstv %s2491_s27 }
  0x49   : > { %s2519_s16 = sld [smem:[#allocation5 + $0x1c]]  ;;  %s2521_s21 = sld [smem:[#allocation5 + $0x15]] }
  0x4a   : > { %s2523_s11 = sld [smem:[#allocation5 + $0x2a]]  ;;  %s2525_s14 = sld [smem:[#allocation5 + $0x23]] }
  0x4b   : > { %2023 = vmatpush3.bf16.msra.mxu0 %v2243_v1  ;;  %s2527_s9 = sld [smem:[#allocation5 + $0x1]]  ;;  %s2529_s20 = sld [smem:[#allocation5 + $0x2]] }
  0x4c   : > { %2024 = vmatprep.subr.bf16.mxu0 %v2243_v1  ;;  %s2531_s6 = sld [smem:[#allocation5 + $0x3]]  ;;  %s2533_s12 = sld [smem:[#allocation5 + $0x4]] }
  0x4d   : > { %s2535_s7 = sld [smem:[#allocation5 + $0x5]]  ;;  %s2544_s15 = sld [smem:[#allocation5 + $0x40]] }
  0x4e   : > { %s2546_s8 = sld [smem:[#allocation5 + $0x39]]  ;;  %s2688_s26 = sld [smem:[#allocation5 + $0x3f]] }
  0x4f   : > { %2025 = vmatpush3.bf16.msra.mxu0 %v2243_v1  ;;  %s2692_s27 = sld [smem:[#allocation5 + $0x38]] }
  0x50   : > { %2026 = vmatprep.subr.bf16.mxu0 %v2243_v1  ;;  %v867_v51 = vstv %s2525_s14  ;;  %s2618_s14 = sld [smem:[#allocation5 + $0x55]] }
  0x53   : > { %2027 = vmatpush3.bf16.msra.mxu0 %v2243_v1 }
  0x54   : > { %2028 = vmatprep.subr.bf16.mxu0 %v2243_v1 }
  0x57   : > { %2029 = vmatpush3.bf16.msra.mxu0 %v2243_v1 }
  0x5a   : > { %394 = vmatmul.mubr.bf16.vlgmr.msra.gmra.mrb[0].mxu0 %v357_v8 }
  0xc2   : > { %v409_v24 = vpop.permute.xlu0 %408 }
  0xc3   : > { %v521_v42 = vpop.permute.xlu1 %520 }
  0xc6   : > { %v414_v25 = vpop.permute.xlu0 %413 }
 0x12d   : > { %v2030_v14 = vpop.f32.mrb[0].mxu0 }
 0x12e   : > { %v2031_v15 = vpop.f32.mrb[1].mxu0 }
 0x12f   : > { %v2032_v16 = vadd.f32 %v2031_v15, %v2030_v14  ;;  %v2033_v17 = vpop.f32.mrb[2].mxu0 }
 0x130   : > { %v2034_v18 = vpop.f32.mrb[3].mxu0 }
 0x131   : > { %v401_v19 = vmul.f32 0.00390625, %v2032_v16 }
 0x133   : > { %2042 = vmatprep.subr.msk.mxu1 %vm423_vm1, %v401_v19 }
 0x134   : > { %2043 = vmatpush3.msk.msra.mxu1 %vm423_vm1, %v401_v19  ;;  %vm877_vm1 = vcmask 392192  }
 0x135   : > { %2045 = vmatmul.mubr.msk.f32.vlgmr.msra.gmra.mrb[0].mxu1 %vm416_vm0, %v403_v20  ;;  %2054 = vmatprep.subr.bf16.mxu1 %v2246_v21  ;;  %v2250_v20 = vmov 1966171168  }
 0x136   : > { %2051 = vmatprep.mubr.msk.f32.mxu1 %vm2247_vm2, %v2248_v22  ;;  %v720_v21 = vunpack.c.l.s4 %v2250_v20  ;;  %vm892_vm2 = vcmask 261120  }
 0x208   : > { %v2046_v26 = vpop.f32.mrb[0].mxu1 }
 0x209   : > { %v499_v27 = vadd.f32 %v2046_v26, %v414_v25  ;;  %v493_v28 = vpop.f32.mrb[1].mxu1  ;;  %v721_v26 = vunpack.c.0.s8 %v720_v21 }
 0x20a   : > { %v494_v29 = vadd.f32 %v493_v28, %v409_v24 }
 0x20b   : > { %v1899_v30 = vmul.f32 -1.442695, %v499_v27 }
 0x20c   : > { %v1898_v31 = vmul.f32 -1.442695, %v494_v29 }
 0x20d   : > { %2130 = vpow2.f32 %v1899_v30 }
 0x20e   : > { %2132 = vpow2.f32 %v1898_v31 }
 0x217   : > { %v2131_v32 = vpop.eup %2130 }
 0x218   : > { %v2133_v33 = vpop.eup %2132  ;;  %v509_v34 = vadd.f32 1.0, %v2131_v32 }
 0x219   : > { %v508_v35 = vadd.f32 1.0, %v2133_v33 }
 0x21a   : > { %2134 = vrcp.f32 %v509_v34 }
 0x21b   : > { %2136 = vrcp.f32 %v508_v35 }
 0x224   : > { %v2135_v36 = vpop.eup %2134 }
 0x225   : > { %v2137_v37 = vpop.eup %2136  ;;  %v515_v38 = vmul.f32 %v2135_v36, %v499_v27 }
 0x226   : > { %v514_v39 = vmul.f32 %v2137_v37, %v494_v29  ;;  %v724_v29 = vsub.s32 %v721_v26, %v2389_v4 }
 0x228   : > { %v2055_v40 = vpack.c.bf16 %v515_v38, %v514_v39 }
 0x22a   : > { %2056 = vmatpush3.bf16.msra.mxu1 %v2055_v40 }
 0x22d   : > { %2052 = vmatmul.mubr.msk.f32.vlgmr.msra.gmra.mrb[2].mxu1 %vm523_vm3, %v516_v41  ;;  %vm1034_vm3 = vcmask 1039360  }
 0x22e   : > { %696 = vmatprep.mubr.bf16.mxu1 %v2245_v12 }
 0x300   : > { %v593_v43 = vpop.f32.mrb[2].mxu1 }
 0x301   : > { %v594_v44 = vadd.f32 %v593_v43, %v521_v42  ;;  %v2053_v45 = vpop.f32.mrb[3].mxu1 }
 0x302   : > { %v940_v45 = vstv %s2479_s18  ;;  %s2556_s18 = sld [smem:[#allocation5 + $0x47]] }
 0x303   : > { %v1901_v46 = vmul.f32 -1.442695, %v594_v44 }
 0x305   : > { %2138 = vpow2.f32 %v1901_v46  ;;  %v926_v46 = vstv %s2481_s22  ;;  %s2558_s22 = sld [smem:[#allocation5 + $0x3a]] }
 0x30f   : > { %v2139_v47 = vpop.eup %2138 }
 0x310   : > { %v600_v48 = vadd.f32 1.0, %v2139_v47  ;;  %v954_v47 = vstv %s2483_s23  ;;  %s2668_s23 = sld [smem:[#allocation5 + $0x53]] }
 0x312   : > { %2140 = vrcp.f32 %v600_v48 }
 0x31c   : > { %v2141_v49 = vpop.eup %2140 }
 0x31d   : > { %v603_v50 = vpack.c.bf16 %v2141_v49, %v2141_v49  ;;  %v1052_v49 = vstv %s2485_s24  ;;  %s2670_s24 = sld [smem:[#allocation5 + $0x61]] }
 0x31f   : > { %606 = vperm.xlu1 %2129, %v603_v50   ;;  %v1178_v50 = vstv %s2487_s25  ;;  %s2686_s25 = sld [smem:[#allocation5 + $0x5a]] }
 0x39e   : > { %v607_v56 = vpop.permute.xlu1 %606 }
 0x39f   : > { %v615_v57 = vrot.slane %v607_v56, %v614_v55  ;;  %v968_v55 = vstv %s2493_s28  ;;  %v1192_v56 = vstv %s2495_s29  ;;  %s2694_s28 = sld [smem:[#allocation5 + $0x4d]]  ;;  %s2252_s29 = smov 96  }
 0x3a1   : > { %v2452_v58 = vmul.bf16 %v615_v57, %v2402_v7  ;;  %v1304_v57 = vstv %s2497_s30  ;;  %s2253_s30 = smov 112  }
 0x3a3   : > { %v625_v59 = vrot.slane %v2452_v58, %v2398_v6 }
 0x3a5   : > { %v626_v60 = vcombine.high %v625_v59, %v625_v59  ;;  %v630_v61 = vsel %vm627_vm8, %v625_v59, 4286644096  ;;  %v660_v3 = vsel %vm627_vm8, %v625_v59, 0  ;;  %v1094_v59 = vstv %s2499_s10  ;;  %s2704_s10 = sld [smem:[#allocation5 + $0x46]] }
 0x3a6   : > { %v632_v62 = vunpack.i.l.bf16 %v630_v61  ;;  %v633_v63 = vunpack.i.h.bf16 %v630_v61  ;;  %v1430_v61 = vstv %s2503_s0  ;;  %s2574_s0 = sld [smem:[#allocation5 + $0x6]] }
 0x3a7   : > { %v643_v2 = vsel %vm627_vm8, %v626_v60, 4286644096  ;;  %1902 = vmatprep.subr.msk.bf16.mxu1 %vm627_vm8, %v626_v60 }
 0x3a8   : > { %v645_v5 = vunpack.i.l.bf16 %v643_v2  ;;  %v646_v8 = vunpack.i.h.bf16 %v643_v2  ;;  %665 = vmatpush1.bf16.msra.mxu1 %v660_v3  ;;  %v634_v7 = vmax.f32 %v632_v62, %v633_v63  ;;  %v1318_v62 = vstv %s2505_s1  ;;  %s2576_s1 = sld [smem:[#allocation5 + $0x3b]] }
 0x3a9   : > { %v1500_v2 = vstv %s2507_s2  ;;  %v1598_v3 = vstv %s2509_s3  ;;  %s2578_s2 = sld [smem:[#allocation5 + $0x41]]  ;;  %s2584_s3 = sld [smem:[#allocation5 + $0x48]] }
 0x3aa   : > { %v647_v9 = vmax.f32 %v645_v5, %v646_v8  ;;  %v635_v10 = vrot.slane %v634_v7, 4  ;;  %v1626_v5 = vstv %s2511_s4  ;;  %s2586_s4 = sld [smem:[#allocation5 + $0x4e]] }
 0x3ab   : > { %1903 = vmatmul.mubr.msk.bf16.vlgmr.msra.gmra.mrb[4].mxu1 %vm416_vm0, %v2243_v1 }
 0x3ac   : > { %v648_v11 = vrot.slane %v647_v9, 4  ;;  %v636_v13 = vmax.f32 %v634_v7, %v635_v10  ;;  %1775 = vmatprep.mubr.bf16.mxu1 %v2245_v12  ;;  %v1612_v7 = vstv %s2513_s5  ;;  %v806_v10 = vstv %s2517_s13  ;;  %s2600_s5 = sld [smem:[#allocation5 + $0x42]]  ;;  %s2616_s13 = sld [smem:[#allocation5 + $0x4f]] }
 0x3ae   : > { %v649_v14 = vmax.f32 %v647_v9, %v648_v11  ;;  %v637_v15 = vrot.slane %v636_v13, 2  ;;  %v822_v9 = vstv %s2515_s19  ;;  %v852_v11 = vstv %s2519_s16  ;;  %s2628_s16 = sld [smem:[#allocation5 + $0x3d]]  ;;  %s2644_s19 = sld [smem:[#allocation5 + $0x5c]] }
 0x3b0   : > { %v638_v16 = vmax.f32 %v636_v13, %v637_v15  ;;  %v650_v17 = vrot.slane %v649_v14, 2  ;;  %v837_v13 = vstv %s2521_s21  ;;  %v918_v15 = vstv %s2527_s9  ;;  %s2650_s21 = sld [smem:[#allocation5 + $0x49]]  ;;  %s2729_s9 = sld [smem:[#allocation5 + $0x32]] }
 0x3b2   : > { %v639_v18 = vrot.slane %v638_v16, 1  ;;  %v651_v19 = vmax.f32 %v649_v14, %v650_v17  ;;  %v882_v14 = vstv %s2523_s11  ;;  %v1170_v17 = vstv %s2531_s6  ;;  %s2602_s11 = sld [smem:[#allocation5 + $0x3c]]  ;;  %s2740_s6 = sld [smem:[#allocation5 + $0x33]] }
 0x3b4   : > { %v640_v22 = vmax.f32 %v638_v16, %v639_v18  ;;  %v652_v23 = vrot.slane %v651_v19, 1  ;;  %v1044_v16 = vstv %s2529_s20  ;;  %v1296_v18 = vstv %s2533_s12  ;;  %s2742_s20 = sld [smem:[#allocation5 + $0x34]]  ;;  %s2748_s12 = sld [smem:[#allocation5 + $0x35]] }
 0x3b6   : > { %v641_v24 = vpack.i.bf16 %v640_v22, %v640_v22  ;;  %v653_v25 = vmax.f32 %v651_v19, %v652_v23  ;;  %v1422_v19 = vstv %s2535_s7  ;;  %s2782_s7 = sld [smem:[#allocation5 + $0x37]] }
 0x3b8   : > { %v654_v27 = vpack.i.bf16 %v653_v25, %v653_v25  ;;  %v655_v28 = vunpack.c.l.bf16 %v641_v24 }
 0x3ba   : > { %v656_v1 = vunpack.c.l.bf16 %v654_v27 }
 0x3bc   : > { %v718_v30 = vcombine.low %v655_v28, %v656_v1  ;;  %v943_v28 = vstv %s2544_s15  ;;  %v929_v1 = vstv %s2546_s8  ;;  %s2642_s8 = sld [smem:[#allocation5 + $0x43]]  ;;  %s2660_s15 = sld [smem:[#allocation5 + $0x60]] }
 0x3be   : > { %v725_v12 = vrot.slane %v718_v30, %v724_v29 }
 0x3c0   : > { %v732_v31 = vrot.slane %v725_v12, %v724_v29 }
 0x3c2   : > { %733 = vrot.lane.b32.xlu0 %v732_v31, %s2251_s17 }
 0x434   : > { %v734_v33 = vpop.permute.xlu0 %733 }
 0x435   : > { %v735_v34 = vrot.slane %v734_v33, 7 }
 0x437   : > { %v737_v35 = vsel %vm736_vm10, %v735_v34, %v734_v33 }
 0x438   : > { %741 = vst.msk [vmem:[#allocation2] sm:$0x7] %vm740_vm11, %v737_v35  ;;  %v957_v35 = vstv %s2556_s18  ;;  %s2727_s18 = sld [smem:[#allocation5 + $0x54]] }
 0x43f   : > { %v2563_v8 = vld [vmem:[#allocation2] sm:$0x7] }
 0x440   : > { %v941_v20 = vmul.f32 %v940_v45, %v2563_v8  ;;  %v927_v21 = vmul.f32 %v926_v46, %v2563_v8  ;;  %v2595_v22 = vmul.f32 %v954_v47, %v2563_v8  ;;  %v2598_v23 = vmul.f32 %v1052_v49, %v2563_v8 }
 0x441   : > { %v2605_v24 = vmul.f32 %v1178_v50, %v2563_v8  ;;  %v2608_v25 = vmul.f32 %v1066_v52, %v2563_v8  ;;  %v2611_v26 = vmul.f32 %v1080_v53, %v2563_v8  ;;  %v2614_v27 = vmul.f32 %v968_v55, %v2563_v8 }
 0x442   : > { %v2626_v30 = vmul.f32 %v1304_v57, %v2563_v8  ;;  %v2631_v12 = vmul.f32 %v1094_v59, %v2563_v8  ;;  %v2637_v32 = vmul.f32 %v1430_v61, %v2563_v8  ;;  %v2640_v33 = vmul.f32 %v1318_v62, %v2563_v8 }
 0x443   : > { %v2679_v45 = vmul.f32 %v852_v11, %v2563_v8  ;;  %v2682_v46 = vmul.f32 %v837_v13, %v2563_v8  ;;  %v1181_v52 = vstv %s2576_s1  ;;  %v1069_v53 = vstv %s2578_s2  ;;  %s2255_s1 = smov 64   ;;  %s2802_s2 = sld [smem:[#allocation5 + $0x2b]] }
 0x444   : > { %v2700_v55 = vmul.f32 %v867_v51, %v2563_v8  ;;  %v2716_v57 = vmul.f32 %v1044_v16, %v2563_v8  ;;  %v2721_v59 = vmul.f32 %v1170_v17, %v2563_v8  ;;  %v1083_v61 = vstv %s2584_s3  ;;  %s2804_s3 = sld [smem:[#allocation5 + $0x18]] }
 0x445   : > { %v971_v62 = vstv %s2586_s4  ;;  %v1097_v11 = vstv %s2616_s13  ;;  %v985_v13 = vstv %s2618_s14  ;;  %v1321_v51 = vstv %s2642_s8  ;;  %s2814_s4 = sld [smem:[#allocation5 + $0x4a]]  ;;  %s2844_s13 = sld [smem:[#allocation5 + $0x25]] }
 0x446   : > { %v2757_v16 = vmul.f32 %v1422_v19, %v2563_v8  ;;  %s2856_s14 = sld [smem:[#allocation5 + $0x3e]]  ;;  %s2256_s8 = smov 48  }
 0x47e   : > { %v698_v36 = vpop.f32.mrb[4].mxu1 }
 0x47f   : > { %v705_v37 = vmul.f32 0.25, %v698_v36  ;;  %v700_v38 = vpop.f32.mrb[5].mxu1  ;;  %v1055_v36 = vstv %s2558_s22  ;;  %s2254_s22 = smov 80  }
 0x480   : > { %v706_v39 = vmul.f32 0.25, %v700_v38  ;;  %v702_v40 = vpop.f32.mrb[6].mxu1  ;;  %v2656_v38 = vmul.f32 %v1598_v3, %v2563_v8 }
 0x481   : > { %v703_v41 = vpop.f32.mrb[7].mxu1 }
 0x482   : > { %v746_v42 = vcombine.low %v705_v37, %v706_v39  ;;  %v2653_v37 = vmul.f32 %v1500_v2, %v2563_v8  ;;  %v2663_v41 = vmul.f32 %v1626_v5, %v2563_v8  ;;  %v2734_v2 = vmul.f32 %v1296_v18, %v2563_v8 }
 0x483   : > { %v1209_v18 = vstv %s2650_s21  ;;  %s2915_s21 = sld [smem:[#allocation5 + $0x1f]] }
 0x484   : > { %v753_v43 = vrot.slane %v746_v42, %v724_v29  ;;  %v2666_v42 = vmul.f32 %v1612_v7, %v2563_v8 }
 0x486   : > { %v760_v44 = vrot.slane %v753_v43, %v724_v29  ;;  %v2623_v29 = vmul.f32 %v1192_v56, %v2563_v8  ;;  %v2673_v43 = vmul.f32 %v822_v9, %v2563_v8  ;;  %v2711_v56 = vmul.f32 %v918_v15, %v2563_v8 }
 0x487   : > { %v999_v15 = vstv %s2644_s19  ;;  %s2911_s19 = sld [smem:[#allocation5 + $0x2c]] }
 0x488   : > { %761 = vrot.lane.b32.xlu1 %v760_v44, %s2251_s17  ;;  %s2501_s17 = sld [smem:[#allocation5 + $0x24]]  ;;  %v2676_v44 = vmul.f32 %v806_v10, %v2563_v8  ;;  %v1307_v10 = vstv %s2602_s11  ;;  %s2832_s11 = sld [smem:[#allocation5 + $0x19]] }
 0x48e   : > { %v982_v60 = vstv %s2501_s17  ;;  %s2706_s17 = sld [smem:[#allocation5 + $0x5b]] }
 0x48f   : > { %v2634_v31 = vmul.f32 %v982_v60, %v2563_v8  ;;  %v1548_v60 = vstv %s2574_s0  ;;  %s2759_s0 = sld [smem:[#allocation5 + $0x36]] }
 0x490   : > { %v2762_v17 = vmul.f32 %v1548_v60, %v2563_v8 }
 0x4fa   : > { %v762_v48 = vpop.permute.xlu1 %761 }
 0x4fb   : > { %v763_v54 = vrot.slane %v762_v48, 7 }
 0x4fd   : > { %v764_v63 = vsel %vm736_vm10, %v763_v54, %v762_v48  ;;  %v2697_v54 = vmul.f32 %v882_v14, %v2563_v8  ;;  %v1433_v14 = vstv %s2628_s16  ;;  %s2858_s16 = sld [smem:[#allocation5 + $0x44]] }
 0x4fe   : > { %766 = vst.msk [vmem:[#allocation3] sm:$0x7] %vm740_vm11, %v764_v63  ;;  %v1195_v63 = vstv %s2600_s5  ;;  %s2816_s5 = sld [smem:[#allocation5 + $0x56]] }
 0x505   : > { %v2646_v34 = vld [vmem:[#allocation3] sm:$0x7] }
 0x506   : > { %v944_v39 = vmul.f32 %v943_v28, %v2646_v34  ;;  %v930_v40 = vmul.f32 %v929_v1, %v2646_v34  ;;  %v958_v49 = vmul.f32 %v957_v35, %v2646_v34  ;;  %v1056_v50 = vmul.f32 %v1055_v36, %v2646_v34 }
 0x507   : > { %v1182_v7 = vmul.f32 %v1181_v52, %v2646_v34  ;;  %v1070_v9 = vmul.f32 %v1069_v53, %v2646_v34  ;;  %v1084_v19 = vmul.f32 %v1083_v61, %v2646_v34  ;;  %v972_v1 = vmul.f32 %v971_v62, %v2646_v34 }
 0x508   : > { %v945_v47 = vadd.f32 %v944_v39, %v941_v20  ;;  %v931_v48 = vadd.f32 %v930_v40, %v927_v21  ;;  %v959_v3 = vadd.f32 %v958_v49, %v2595_v22  ;;  %v1057_v5 = vadd.f32 %v1056_v50, %v2598_v23 }
 0x509   : > { %v1503_v20 = vstv %s2660_s15  ;;  %v1601_v21 = vstv %s2668_s23  ;;  %v1629_v22 = vstv %s2670_s24  ;;  %v1183_v23 = vadd.f32 %v1182_v7, %v2605_v24  ;;  %s2883_s15 = sld [smem:[#allocation5 + $0xd]]  ;;  %s2885_s23 = sld [smem:[#allocation5 + $0x13]] }
 0x50a   : > { %947 = vrot.lane.b32.xlu1 %v945_v47, %s2252_s29  ;;  %933 = vrot.lane.b32.xlu0 %v931_v48, %s2253_s30  ;;  %v1071_v28 = vadd.f32 %v1070_v9, %v2608_v25  ;;  %v1196_v35 = vmul.f32 %v1195_v63, %v2646_v34  ;;  %v1615_v36 = vstv %s2686_s25  ;;  %v825_v39 = vstv %s2688_s26  ;;  %s2903_s24 = sld [smem:[#allocation5 + $0x5d]]  ;;  %s2905_s25 = sld [smem:[#allocation5 + $0x50]] }
 0x50b   : > { %v810_v40 = vstv %s2692_s27  ;;  %v1308_v24 = vmul.f32 %v1307_v10, %v2646_v34  ;;  %v1098_v25 = vmul.f32 %v1097_v11, %v2646_v34  ;;  %v986_v47 = vmul.f32 %v985_v13, %v2646_v34  ;;  %s2921_s26 = sld [smem:[#allocation5 + $0x4b]]  ;;  %s2923_s27 = sld [smem:[#allocation5 + $0x51]] }
 0x50c   : > { %v855_v48 = vstv %s2694_s28  ;;  %v840_v49 = vstv %s2704_s10  ;;  %v885_v50 = vstv %s2706_s17  ;;  %v870_v52 = vstv %s2727_s18  ;;  %s2257_s28 = smov 32   ;;  %s2931_s10 = sld [smem:[#allocation5 + $0x1a]] }
 0x50d   : > { %v921_v53 = vstv %s2729_s9  ;;  %v1085_v60 = vadd.f32 %v1084_v19, %v2611_v26  ;;  %v973_v61 = vadd.f32 %v972_v1, %v2614_v27  ;;  %v1047_v62 = vstv %s2740_s6  ;;  %s2933_s17 = sld [smem:[#allocation5 + $0x20]]  ;;  %s2939_s18 = sld [smem:[#allocation5 + $0x57]] }
 0x50e   : > { %961 = vrot.lane.b32.xlu1 %v959_v3, %s2254_s22  ;;  %1059 = vrot.lane.b32.xlu0 %v1057_v5, %s2253_s30  ;;  %v1173_v63 = vstv %s2742_s20  ;;  %v1197_v3 = vadd.f32 %v1196_v35, %v2623_v29  ;;  %v1434_v5 = vmul.f32 %v1433_v14, %v2646_v34  ;;  %v1322_v7 = vmul.f32 %v1321_v51, %v2646_v34  ;;  %s2941_s9 = sld [smem:[#allocation5 + $0x45]]  ;;  %s2949_s6 = sld [smem:[#allocation5 + $0x26]] }
 0x50f   : > { %v1299_v9 = vstv %s2748_s12  ;;  %v1309_v10 = vadd.f32 %v1308_v24, %v2626_v30  ;;  %v1099_v26 = vadd.f32 %v1098_v25, %v2631_v12  ;;  %v987_v27 = vadd.f32 %v986_v47, %v2634_v31  ;;  %s2951_s20 = sld [smem:[#allocation5 + $0x14]]  ;;  %s2957_s12 = sld [smem:[#allocation5 + $0x52]] }
 0x510   : > { %v1425_v11 = vstv %s2759_s0  ;;  %v1504_v29 = vmul.f32 %v1503_v20, %v2646_v34  ;;  %v1602_v13 = vmul.f32 %v1601_v21, %v2646_v34  ;;  %v1630_v14 = vmul.f32 %v1629_v22, %v2646_v34  ;;  %s2959_s0 = sld [smem:[#allocation5 + $0x58]] }
 0x511   : > { %v1616_v51 = vmul.f32 %v1615_v36, %v2646_v34  ;;  %v811_v30 = vmul.f32 %v810_v40, %v2646_v34  ;;  %v856_v12 = vmul.f32 %v855_v48, %v2646_v34  ;;  %v841_v31 = vmul.f32 %v840_v49, %v2646_v34 }
 0x512   : > { %1185 = vrot.lane.b32.xlu1 %v1183_v23, %s2253_s30  ;;  %1073 = vrot.lane.b32.xlu0 %v1071_v28, %s2252_s29  ;;  %v826_v23 = vmul.f32 %v825_v39, %v2646_v34  ;;  %v2819_v20 = vadd.f32 %v1504_v29, %v2653_v37  ;;  %v2822_v21 = vadd.f32 %v1602_v13, %v2656_v38  ;;  %v996_v47 = vstv %s2802_s2  ;;  %s2969_s2 = sld [smem:[#allocation5 + $0x27]] }
 0x513   : > { %v2825_v22 = vadd.f32 %v1630_v14, %v2663_v41  ;;  %v2828_v28 = vadd.f32 %v1616_v51, %v2666_v42  ;;  %v2838_v37 = vadd.f32 %v811_v30, %v2676_v44  ;;  %v2841_v38 = vadd.f32 %v856_v12, %v2679_v45 }
 0x514   : > { %v2835_v19 = vadd.f32 %v826_v23, %v2673_v43  ;;  %v1551_v41 = vstv %s2782_s7  ;;  %v2847_v42 = vadd.f32 %v841_v31, %v2682_v46  ;;  %v886_v1 = vmul.f32 %v885_v50, %v2646_v34  ;;  %s2967_s7 = sld [smem:[#allocation5 + $0x21]] }
 0x515   : > { %v871_v35 = vmul.f32 %v870_v52, %v2646_v34  ;;  %v922_v36 = vmul.f32 %v921_v53, %v2646_v34  ;;  %v1048_v43 = vmul.f32 %v1047_v62, %v2646_v34  ;;  %v1174_v44 = vmul.f32 %v1173_v63, %v2646_v34 }
 0x516   : > { %1087 = vrot.lane.b32.xlu1 %v1085_v60, %s2254_s22  ;;  %975 = vrot.lane.b32.xlu0 %v973_v61, %s2255_s1  ;;  %v1300_v45 = vmul.f32 %v1299_v9, %v2646_v34  ;;  %v1426_v39 = vmul.f32 %v1425_v11, %v2646_v34  ;;  %v2861_v46 = vadd.f32 %v886_v1, %v2697_v54  ;;  %v1206_v48 = vstv %s2804_s3  ;;  %s2975_s3 = sld [smem:[#allocation5 + $0x5e]] }
 0x517   : > { %v2864_v40 = vadd.f32 %v871_v35, %v2700_v55  ;;  %v2867_v24 = vadd.f32 %v922_v36, %v2711_v56  ;;  %v1552_v25 = vmul.f32 %v1551_v41, %v2646_v34  ;;  %v2873_v54 = vadd.f32 %v1048_v43, %v2716_v57 }
 0x518   : > { %v2876_v55 = vadd.f32 %v1174_v44, %v2721_v59  ;;  %v2879_v56 = vadd.f32 %v1300_v45, %v2734_v2  ;;  %v2888_v49 = vadd.f32 %v1426_v39, %v2757_v16  ;;  %v1435_v59 = vadd.f32 %v1434_v5, %v2637_v32 }
 0x519   : > { %v2891_v57 = vadd.f32 %v1552_v25, %v2762_v17  ;;  %v1323_v50 = vadd.f32 %v1322_v7, %v2640_v33  ;;  %v1000_v2 = vmul.f32 %v999_v15, %v2646_v34  ;;  %v1210_v52 = vmul.f32 %v1209_v18, %v2646_v34 }
 0x51a   : > { %1199 = vrot.lane.b32.xlu1 %v1197_v3, %s2252_s29  ;;  %1311 = vrot.lane.b32.xlu0 %v1309_v10, %s2253_s30  ;;  %v1335_v53 = vstv %s2814_s4  ;;  %v1111_v60 = vstv %s2816_s5  ;;  %v997_v32 = vmul.f32 %v996_v47, %v2563_v8  ;;  %v1207_v33 = vmul.f32 %v1206_v48, %v2563_v8  ;;  %s2977_s4 = sld [smem:[#allocation5 + $0x4c]]  ;;  %s2985_s5 = sld [smem:[#allocation5 + $0x2d]] }
 0x51b   : > { %v1332_v15 = vstv %s2832_s11  ;;  %v1108_v16 = vstv %s2844_s13  ;;  %v1336_v61 = vmul.f32 %v1335_v53, %v2646_v34  ;;  %v1112_v62 = vmul.f32 %v1111_v60, %v2646_v34  ;;  %s2987_s11 = sld [smem:[#allocation5 + $0x1b]]  ;;  %s2993_s13 = sld [smem:[#allocation5 + $0x59]] }
 0x51c   : > { %v1001_v17 = vadd.f32 %v1000_v2, %v997_v32  ;;  %v1211_v18 = vadd.f32 %v1210_v52, %v1207_v33  ;;  %v1559_v63 = vstv %s2856_s14  ;;  %v1447_v3 = vstv %s2858_s16  ;;  %s2995_s14 = sld [smem:[#allocation5 + $0x5f]]  ;;  %s3003_s16 = sld [smem:[#allocation5 + $0x28]] }
 0x51d   : > { %v1333_v5 = vmul.f32 %v1332_v15, %v2563_v8  ;;  %v1109_v7 = vmul.f32 %v1108_v16, %v2563_v8  ;;  %v1556_v9 = vstv %s2883_s15  ;;  %v1444_v10 = vstv %s2885_s23  ;;  %s3005_s15 = sld [smem:[#allocation5 + $0x2e]]  ;;  %s2261_s23 = smov 124  }
 0x51e   : > { %1101 = vrot.lane.b32.xlu1 %v1099_v26, %s2255_s1  ;;  %989 = vrot.lane.b32.xlu0 %v987_v27, %s2256_s8  ;;  %v1560_v11 = vmul.f32 %v1559_v63, %v2646_v34  ;;  %v1448_v29 = vmul.f32 %v1447_v3, %v2646_v34  ;;  %v1125_v13 = vstv %s2903_s24  ;;  %v1223_v14 = vstv %s2905_s25  ;;  %s2262_s24 = smov 123   ;;  %s2263_s25 = smov 122  }
 0x51f   : > { %v1337_v26 = vadd.f32 %v1336_v61, %v1333_v5  ;;  %v1113_v27 = vadd.f32 %v1112_v62, %v1109_v7  ;;  %v1557_v51 = vmul.f32 %v1556_v9, %v2563_v8  ;;  %v1445_v23 = vmul.f32 %v1444_v10, %v2563_v8 }
 0x520   : > { %v1122_v30 = vstv %s2911_s19  ;;  %v1220_v12 = vstv %s2915_s21  ;;  %v1126_v1 = vmul.f32 %v1125_v13, %v2646_v34  ;;  %v1224_v35 = vmul.f32 %v1223_v14, %v2646_v34 }
 0x521   : > { %v1561_v31 = vadd.f32 %v1560_v11, %v1557_v51  ;;  %v1449_v41 = vadd.f32 %v1448_v29, %v1445_v23  ;;  %v1461_v36 = vstv %s2921_s26  ;;  %v1349_v43 = vstv %s2923_s27  ;;  %s3314_s26 = sld [smem:[#allocation28_spill]]  ;;  %s3189_s27 = sld [smem:[#allocation4]] }
 0x522   : > { %1437 = vrot.lane.b32.xlu1 %v1435_v59, %s2253_s30  ;;  %1325 = vrot.lane.b32.xlu0 %v1323_v50, %s2252_s29  ;;  %v1123_v44 = vmul.f32 %v1122_v30, %v2563_v8  ;;  %v1221_v45 = vmul.f32 %v1220_v12, %v2563_v8  ;;  %v1458_v39 = vstv %s2931_s10  ;;  %v1346_v25 = vstv %s2933_s17 }
 0x523   : > { %v1462_v59 = vmul.f32 %v1461_v36, %v2646_v34  ;;  %v1350_v50 = vmul.f32 %v1349_v43, %v2646_v34  ;;  %v1237_v2 = vstv %s2939_s18  ;;  %v1573_v52 = vstv %s2941_s9  ;;  %s3316_s18 = sld [smem:[#allocation27_spill]]  ;;  %s3317_s9 = sld [smem:[#allocation12_spill]] }
 0x524   : > { %v1127_v47 = vadd.f32 %v1126_v1, %v1123_v44  ;;  %v1225_v48 = vadd.f32 %v1224_v35, %v1221_v45  ;;  %v1459_v53 = vmul.f32 %v1458_v39, %v2563_v8  ;;  %v1347_v60 = vmul.f32 %v1346_v25, %v2563_v8 }
 0x525   : > { %v1234_v32 = vstv %s2949_s6  ;;  %v1570_v33 = vstv %s2951_s20  ;;  %v1475_v61 = vstv %s2957_s12  ;;  %v1363_v62 = vstv %s2959_s0  ;;  %s3318_s6 = sld [smem:[#allocation15_spill]] }
 0x526   : > { %1003 = vrot.lane.b32.xlu1 %v1001_v17, %s2257_s28  ;;  %1213 = vrot.lane.b32.xlu0 %v1211_v18, %s2254_s22  ;;  %v1463_v15 = vadd.f32 %v1462_v59, %v1459_v53  ;;  %v1351_v16 = vadd.f32 %v1350_v50, %v1347_v60  ;;  %v1238_v17 = vmul.f32 %v1237_v2, %v2646_v34  ;;  %v1472_v5 = vstv %s2967_s7 }
 0x527   : > { %v1574_v18 = vmul.f32 %v1573_v52, %v2646_v34  ;;  %v1235_v63 = vmul.f32 %v1234_v32, %v2563_v8  ;;  %v1571_v3 = vmul.f32 %v1570_v33, %v2563_v8  ;;  %v1360_v7 = vstv %s2969_s2 }
 0x528   : > { %v1251_v11 = vstv %s2975_s3  ;;  %v1587_v29 = vstv %s2977_s4  ;;  %v1473_v13 = vmul.f32 %v1472_v5, %v2563_v8  ;;  %v1361_v14 = vmul.f32 %v1360_v7, %v2563_v8 }
 0x529   : > { %v1239_v9 = vadd.f32 %v1238_v17, %v1235_v63  ;;  %v1575_v10 = vadd.f32 %v1574_v18, %v1571_v3  ;;  %v1248_v51 = vstv %s2985_s5  ;;  %v1584_v23 = vstv %s2987_s11  ;;  %s338_s20 = sand.u32 1, %s3317_s9   ;;  %s3320_s11 = sld [smem:[#allocation29_spill]] }
 0x52a   : > { %1339 = vrot.lane.b32.xlu1 %v1337_v26, %s2254_s22  ;;  %1115 = vrot.lane.b32.xlu0 %v1113_v27, %s2256_s8  ;;  %v1476_v26 = vmul.f32 %v1475_v61, %v2646_v34  ;;  %v1364_v27 = vmul.f32 %v1363_v62, %v2646_v34  ;;  %v1489_v1 = vstv %s2993_s13  ;;  %v1377_v35 = vstv %s2995_s14  ;;  %s1892_s0 = sshll.u32 %s338_s20, 4  ;;  %s1801_s14 = scalar_lea.sflag [#allocation6], %s338_s20 }
 0x52b   : > { %v1249_v36 = vmul.f32 %v1248_v51, %v2563_v8  ;;  %v1585_v43 = vmul.f32 %v1584_v23, %v2563_v8  ;;  %v1486_v44 = vstv %s3003_s16  ;;  %v1374_v45 = vstv %s3005_s15  ;;  %s2013_s7 = sshll.u32 %s3318_s6, 8  ;;  %s340_s2 = scalar_lea.vmem [#allocation8], %s1892_s0 }
 0x52c   : > { %v1477_v30 = vadd.f32 %v1476_v26, %v1473_v13  ;;  %v1365_v12 = vadd.f32 %v1364_v27, %v1361_v14  ;;  %v1487_v59 = vmul.f32 %v1486_v44, %v2563_v8  ;;  %v1375_v50 = vmul.f32 %v1374_v45, %v2563_v8  ;;  %s1815_s3 = sshll.u32 %s340_s2, 4  ;;  %s3220_s3 = int_to_ptr.vmem [resolvable:$true] %s1815_s3 }
 0x52d   : > { %v3072_v14 = vsub.s32 1, %v2389_v4  ;;  %v3075_v51 = vsub.s32 0, %v2389_v4  ;;  %s2174_s15 = scalar_lea.vmem %s3220_s3, 256 }
 0x52e   : > { %1563 = vrot.lane.b32.xlu1 %v1561_v31, %s2253_s30  ;;  %1451 = vrot.lane.b32.xlu0 %v1449_v41, %s2252_s29  ;;  %v1252_v31 = vmul.f32 %v1251_v11, %v2646_v34  ;;  %v1588_v41 = vmul.f32 %v1587_v29, %v2646_v34  ;;  %p2175_p9 = scmp.ne.s32.totalorder %s3220_s3, %s2174_s15 }
 0x52f   : > { %s3321_s16 = smov %s3320_s11  ;;  %s3218_s13 = scalar_lea.hbm %s3320_s11, %s2013_s7 }
 0x530   : > { %v1253_v39 = vadd.f32 %v1252_v31, %v1249_v36  ;;  %v1589_v25 = vadd.f32 %v1588_v41, %v1585_v43  ;;  %p2176_p10 = pnand %p2175_p9, %p2356_p5 }
 0x532   : > { %1129 = vrot.lane.b32.xlu1 %v1127_v47, %s2257_s28  ;;  %1227 = vrot.lane.b32.xlu0 %v1225_v48, %s2255_s1  ;;  %v1490_v47 = vmul.f32 %v1489_v1, %v2646_v34  ;;  %v1378_v48 = vmul.f32 %v1377_v35, %v2646_v34  ;;  %p2177_p12 = pneg %p2176_p10 }
 0x534   : > { %v1491_v2 = vadd.f32 %v1490_v47, %v1487_v59  ;;  %v1379_v52 = vadd.f32 %v1378_v48, %v1375_v50 }
 0x536   : > { %1465 = vrot.lane.b32.xlu1 %v1463_v15, %s2254_s22  ;;  %1353 = vrot.lane.b32.xlu0 %v1351_v16, %s2255_s1 }
 0x53a   : > { %1241 = vrot.lane.b32.xlu1 %v1239_v9, %s2256_s8  ;;  %1577 = vrot.lane.b32.xlu0 %v1575_v10, %s2252_s29 }
 0x53e   : > { %1479 = vrot.lane.b32.xlu1 %v1477_v30, %s2255_s1  ;;  %1367 = vrot.lane.b32.xlu0 %v1365_v12, %s2256_s8 }
 0x542   : > { %1255 = vrot.lane.b32.xlu1 %v1253_v39, %s2257_s28  ;;  %1591 = vrot.lane.b32.xlu0 %v1589_v25, %s2254_s22  ;;  %v3086_v39 = vsub.s32 2, %v2389_v4 }
 0x546   : > { %1493 = vrot.lane.b32.xlu1 %v1491_v2, %s2256_s8  ;;  %1381 = vrot.lane.b32.xlu0 %v1379_v52, %s2257_s28 }
 0x54a   : > { %1507 = vrot.lane.b32.xlu1 %v2819_v20, %s2257_s28  ;;  %1605 = vrot.lane.b32.xlu0 %v2822_v21, %s2255_s1 }
 0x54e   : > { %1633 = vrot.lane.b32.xlu1 %v2825_v22, %s2257_s28  ;;  %1619 = vrot.lane.b32.xlu0 %v2828_v28, %s2256_s8 }
 0x552   : > { %829 = vrot.lane.b32.xlu1 %v2835_v19, %s2252_s29  ;;  %814 = vrot.lane.b32.xlu0 %v2838_v37, %s2253_s30  ;;  %s2258_s29 = smov 127   ;;  %s2259_s30 = smov 126  }
 0x556   : > { %859 = vrot.lane.b32.xlu1 %v2841_v38, %s2255_s1  ;;  %844 = vrot.lane.b32.xlu0 %v2847_v42, %s2254_s22  ;;  %s3123_s22 = sld [smem:[#allocation5 + $0x31]]  ;;  %s3136_s1 = sld [smem:[#allocation5]] }
 0x55a   : > { %889 = vrot.lane.b32.xlu1 %v2861_v46, %s2257_s28  ;;  %874 = vrot.lane.b32.xlu0 %v2864_v40, %s2256_s8  ;;  %s2260_s8 = smov 125   ;;  %s3315_s28 = sld [smem:[#allocation20_spill]] }
 0x57c   : > { %v948_v8 = vpop.permute.xlu1 %947  ;;  %v934_v34 = vpop.permute.xlu0 %933 }
 0x57d   : > { %v935_v19 = vrot.slane %v934_v34, 1  ;;  %v949_v46 = vrot.slane %v948_v8, 1 }
 0x57f   : > { %v936_v53 = vsel %vm817_vm12, %v934_v34, %v935_v19  ;;  %v950_v16 = vsel %vm832_vm13, %v948_v8, %v949_v46 }
 0x580   : > { %v962_v20 = vpop.permute.xlu1 %961  ;;  %v1060_v21 = vpop.permute.xlu0 %1059  ;;  %v938_v40 = vadd.f32 %v936_v53, %v2867_v24 }
 0x581   : > { %v963_v32 = vrot.slane %v962_v20, 1  ;;  %v1061_v7 = vrot.slane %v1060_v21, 1 }
 0x582   : > { %v952_v18 = vadd.f32 %v950_v16, %v938_v40 }
 0x583   : > { %v964_v61 = vsel %vm847_vm14, %v962_v20, %v963_v32  ;;  %v1062_v23 = vsel %vm817_vm12, %v1060_v21, %v1061_v7 }
 0x584   : > { %v3055_v22 = vpop.permute.xlu1 %1185  ;;  %v1074_v28 = vpop.permute.xlu0 %1073  ;;  %v966_v24 = vadd.f32 %v964_v61, %v952_v18  ;;  %v1064_v43 = vadd.f32 %v1062_v23, %v2873_v54 }
 0x585   : > { %v1075_v11 = vrot.slane %v1074_v28, 1  ;;  %v1187_v19 = vrot.slane %v3055_v22, 1 }
 0x587   : > { %v1076_v35 = vsel %vm832_vm13, %v1074_v28, %v1075_v11 }
 0x588   : > { %v1088_v37 = vpop.permute.xlu1 %1087  ;;  %v976_v38 = vpop.permute.xlu0 %975  ;;  %v1078_v48 = vadd.f32 %v1076_v35, %v1064_v43 }
 0x589   : > { %v977_v17 = vrot.slane %v976_v38, 1  ;;  %v1089_v30 = vrot.slane %v1088_v37, 1 }
 0x58b   : > { %v978_v5 = vsel %vm862_vm15, %v976_v38, %v977_v17  ;;  %v1090_v25 = vsel %vm847_vm14, %v1088_v37, %v1089_v30 }
 0x58c   : > { %v3058_v42 = vpop.permute.xlu1 %1199  ;;  %v3060_v60 = vpop.permute.xlu0 %1311  ;;  %v980_v10 = vadd.f32 %v978_v5, %v966_v24  ;;  %v1092_v2 = vadd.f32 %v1090_v25, %v1078_v48 }
 0x58d   : > { %v1201_v40 = vrot.slane %v3058_v42, 1  ;;  %v1313_v16 = vrot.slane %v3060_v60, 1 }
 0x590   : > { %v1102_v33 = vpop.permute.xlu1 %1101  ;;  %v990_v15 = vpop.permute.xlu0 %989 }
 0x591   : > { %v991_v62 = vrot.slane %v990_v15, 1  ;;  %v1103_v36 = vrot.slane %v1102_v33, 1 }
 0x593   : > { %v992_v9 = vsel %vm877_vm1, %v990_v15, %v991_v62  ;;  %v1104_v54 = vsel %vm862_vm15, %v1102_v33, %v1103_v36  ;;  %v1188_v15 = vsel %vm817_vm12, %v3055_v22, %v1187_v19  ;;  %v1202_v62 = vsel %vm832_vm13, %v3058_v42, %v1201_v40 }
 0x594   : > { %v3065_v63 = vpop.permute.xlu1 %1437  ;;  %v3067_v3 = vpop.permute.xlu0 %1325  ;;  %v994_v13 = vadd.f32 %v992_v9, %v980_v10  ;;  %v1106_v4 = vadd.f32 %v1104_v54, %v1092_v2  ;;  %v1190_v7 = vadd.f32 %v1188_v15, %v2876_v55  ;;  %v1314_v22 = vsel %vm817_vm12, %v3060_v60, %v1313_v16 }
 0x595   : > { %v1327_v5 = vrot.slane %v3067_v3, 1  ;;  %v1439_v42 = vrot.slane %v3065_v63, 1 }
 0x597   : > { %v1328_v30 = vsel %vm832_vm13, %v3067_v3, %v1327_v5 }
 0x598   : > { %v1004_v26 = vpop.permute.xlu1 %1003  ;;  %v1214_v27 = vpop.permute.xlu0 %1213 }
 0x599   : > { %v1005_v29 = vrot.slane %v1004_v26, 1  ;;  %v1215_v17 = vrot.slane %v1214_v27, 1 }
 0x59b   : > { %v1006_v12 = vsel %vm892_vm2, %v1004_v26, %v1005_v29  ;;  %v1216_v10 = vsel %vm847_vm14, %v1214_v27, %v1215_v17  ;;  %v1204_v29 = vadd.f32 %v1202_v62, %v1190_v7 }
 0x59c   : > { %v1008_v31 = vadd.f32 %v1006_v12, %v994_v13  ;;  %v3079_v41 = vpop.permute.xlu1 %1339  ;;  %v1116_v1 = vpop.permute.xlu0 %1115 }
 0x59d   : > { %v1117_v47 = vrot.slane %v1116_v1, 1  ;;  %v1341_v26 = vrot.slane %v3079_v41, 1  ;;  %v1218_v60 = vadd.f32 %v1216_v10, %v1204_v29 }
 0x59e   : > { %v1023_v44 = vrot.slane %v1008_v31, %v3072_v14  ;;  %v1019_v45 = vrot.slane %v1008_v31, %v3075_v51  ;;  %v1027_v52 = vrot.slane %v1008_v31, %v3086_v39  ;;  %v1316_v31 = vadd.f32 %v1314_v22, %v2879_v56 }
 0x59f   : > { %v1118_v8 = vsel %vm877_vm1, %v1116_v1, %v1117_v47  ;;  %v1342_v1 = vsel %vm847_vm14, %v3079_v41, %v1341_v26  ;;  %v1440_v56 = vsel %vm817_vm12, %v3065_v63, %v1439_v42 }
 0x5a0   : > { %v3089_v59 = vpop.permute.xlu1 %1563  ;;  %v3091_v50 = vpop.permute.xlu0 %1451  ;;  %1030 = vrot.lane.b32.xlu1 %v1023_v44, %s2258_s29  ;;  %1028 = vrot.lane.b32.xlu0 %v1019_v45, %s2258_s29  ;;  %v1120_v28 = vadd.f32 %v1118_v8, %v1106_v4  ;;  %v1330_v43 = vadd.f32 %v1328_v30, %v1316_v31 }
 0x5a1   : > { %v1453_v27 = vrot.slane %v3091_v50, 1  ;;  %v1565_v44 = vrot.slane %v3089_v59, 1 }
 0x5a2   : > { %v1344_v2 = vadd.f32 %v1342_v1, %v1330_v43 }
 0x5a3   : > { %v1454_v41 = vsel %vm832_vm13, %v3091_v50, %v1453_v27  ;;  %v1566_v63 = vsel %vm817_vm12, %v3089_v59, %v1565_v44 }
 0x5a4   : > { %v1130_v34 = vpop.permute.xlu1 %1129  ;;  %v1228_v20 = vpop.permute.xlu0 %1227  ;;  %1032 = vrot.lane.b32.xlu0 %v1027_v52, %s2258_s29  ;;  %s2264_s29 = smov [#allocation8]  }
 0x5a5   : > { %v1131_v21 = vrot.slane %v1130_v34, 1  ;;  %v1229_v24 = vrot.slane %v1228_v20, 1 }
 0x5a7   : > { %v1132_v37 = vsel %vm892_vm2, %v1130_v34, %v1131_v21  ;;  %v1230_v55 = vsel %vm862_vm15, %v1228_v20, %v1229_v24  ;;  %v1442_v21 = vadd.f32 %v1440_v56, %v2888_v49 }
 0x5a8   : > { %v1134_v38 = vadd.f32 %v1132_v37, %v1120_v28  ;;  %v1466_v53 = vpop.permute.xlu1 %1465  ;;  %v1354_v46 = vpop.permute.xlu0 %1353  ;;  %v1232_v45 = vadd.f32 %v1230_v55, %v1218_v60 }
 0x5a9   : > { %v1355_v12 = vrot.slane %v1354_v46, 1  ;;  %v1467_v47 = vrot.slane %v1466_v53, 1 }
 0x5aa   : > { %v1145_v32 = vrot.slane %v1134_v38, %v3075_v51  ;;  %v1149_v33 = vrot.slane %v1134_v38, %v3072_v14  ;;  %v1153_v9 = vrot.slane %v1134_v38, %v3086_v39 }
 0x5ab   : > { %v1356_v48 = vsel %vm862_vm15, %v1354_v46, %v1355_v12  ;;  %v1468_v46 = vsel %vm847_vm14, %v1466_v53, %v1467_v47  ;;  %v1568_v53 = vadd.f32 %v1566_v63, %v2891_v57 }
 0x5ac   : > { %v1242_v18 = vpop.permute.xlu1 %1241  ;;  %v1578_v61 = vpop.permute.xlu0 %1577  ;;  %1154 = vrot.lane.b32.xlu1 %v1145_v32, %s2259_s30  ;;  %1156 = vrot.lane.b32.xlu0 %v1149_v33, %s2259_s30  ;;  %v1358_v28 = vadd.f32 %v1356_v48, %v1344_v2  ;;  %v1456_v33 = vadd.f32 %v1454_v41, %v1442_v21 }
 0x5ad   : > { %v1243_v11 = vrot.slane %v1242_v18, 1  ;;  %v1579_v8 = vrot.slane %v1578_v61, 1 }
 0x5ae   : > { %v1470_v62 = vadd.f32 %v1468_v46, %v1456_v33 }
 0x5af   : > { %v1244_v35 = vsel %vm877_vm1, %v1242_v18, %v1243_v11  ;;  %v1580_v59 = vsel %vm832_vm13, %v1578_v61, %v1579_v8 }
 0x5b0   : > { %v1480_v13 = vpop.permute.xlu1 %1479  ;;  %v1368_v23 = vpop.permute.xlu0 %1367  ;;  %1158 = vrot.lane.b32.xlu1 %v1153_v9, %s2259_s30  ;;  %v1246_v52 = vadd.f32 %v1244_v35, %v1232_v45  ;;  %v800_v9 = vstv %s3123_s22  ;;  %v1582_v11 = vadd.f32 %v1580_v59, %v1568_v53  ;;  %v795_v35 = vld [vmem:[#allocation2] sm:$0x3]  ;;  %s2178_s30 = sshll.u32 %s2264_s29, 4  ;;  %s2179_s30 = int_to_ptr.vmem [resolvable:$false] %s2178_s30 }
 0x5b1   : > { %v1369_v36 = vrot.slane %v1368_v23, 1  ;;  %v1481_v4 = vrot.slane %v1480_v13, 1  ;;  %s2180_s22 = scalar_lea.vmem %s2179_s30, 512  ;;  %p2181_p13 = scmp.lt.s32.totalorder %s3220_s3, %s2179_s30 }
 0x5b2   : > { %p2182_p0 = scmp.lt.s32.totalorder %s2180_s22, %s2174_s15 }
 0x5b3   : > { %v1370_v34 = vsel %vm877_vm1, %v1368_v23, %v1369_v36  ;;  %v1482_v17 = vsel %vm862_vm15, %v1480_v13, %v1481_v4  ;;  %v799_v23 = vld [vmem:[#allocation3] sm:$0x3]  ;;  %v796_v36 = vstv %s3136_s1 }
 0x5b4   : > { %v1256_v25 = vpop.permute.xlu1 %1255  ;;  %v1592_v3 = vpop.permute.xlu0 %1591  ;;  %v1372_v15 = vadd.f32 %v1370_v34, %v1358_v28  ;;  %v1484_v29 = vadd.f32 %v1482_v17, %v1470_v62  ;;  %v801_v43 = vmul.f32 %v800_v9, %v799_v23  ;;  %p2183_p1 = por %p2182_p0, %p2181_p13 }
 0x5b5   : > { %v1257_v54 = vrot.slane %v1256_v25, 1  ;;  %v1593_v40 = vrot.slane %v1592_v3, 1 }
 0x5b6   : > { %p2184_p2 = pnand %p2183_p1, %p2177_p12 }
 0x5b7   : > { %v1258_v20 = vsel %vm892_vm2, %v1256_v25, %v1257_v54  ;;  %v1594_v22 = vsel %vm847_vm14, %v1592_v3, %v1593_v40  ;;  %v797_v54 = vmul.f32 %v796_v36, %v795_v35 }
 0x5b8   : > { %v1260_v19 = vadd.f32 %v1258_v20, %v1246_v52  ;;  %v1494_v37 = vpop.permute.xlu1 %1493  ;;  %v1382_v38 = vpop.permute.xlu0 %1381  ;;  %v1596_v55 = vadd.f32 %v1594_v22, %v1582_v11 }
 0x5b9   : > { %v1495_v50 = vrot.slane %v1494_v37, 1  ;;  %v1383_v32 = vrot.slane %v1382_v38, 1  ;;  %v802_v34 = vadd.f32 %v801_v43, %v797_v54 }
 0x5ba   : > { %v1275_v16 = vrot.slane %v1260_v19, %v3072_v14  ;;  %v1271_v49 = vrot.slane %v1260_v19, %v3075_v51  ;;  %v1279_v57 = vrot.slane %v1260_v19, %v3086_v39 }
 0x5bb   : > { %v1384_v18 = vsel %vm892_vm2, %v1382_v38, %v1383_v32  ;;  %v1496_v10 = vsel %vm877_vm1, %v1494_v37, %v1495_v50 }
 0x5bc   : > { %v1386_v5 = vadd.f32 %v1384_v18, %v1372_v15  ;;  %v1508_v24 = vpop.permute.xlu1 %1507  ;;  %v1606_v7 = vpop.permute.xlu0 %1605  ;;  %1282 = vrot.lane.b32.xlu1 %v1275_v16, %s2260_s8  ;;  %1280 = vrot.lane.b32.xlu0 %v1271_v49, %s2260_s8  ;;  %v1498_v12 = vadd.f32 %v1496_v10, %v1484_v29  ;;  %v1719_v10 = vld [vmem:[%s3314_s26] sm:$0xff] }
 0x5bd   : > { %v1509_v26 = vrot.slane %v1508_v24, 1  ;;  %v1607_v61 = vrot.slane %v1606_v7, 1 }
 0x5be   : > { %v1397_v13 = vrot.slane %v1386_v5, %v3075_v51  ;;  %v1405_v25 = vrot.slane %v1386_v5, %v3086_v39  ;;  %v1401_v3 = vrot.slane %v1386_v5, %v3072_v14 }
 0x5bf   : > { %v1510_v42 = vsel %vm892_vm2, %v1508_v24, %v1509_v26  ;;  %v1608_v30 = vsel %vm862_vm15, %v1606_v7, %v1607_v61 }
 0x5c0   : > { %v1634_v31 = vpop.permute.xlu1 %1633  ;;  %v1620_v60 = vpop.permute.xlu0 %1619  ;;  %1406 = vrot.lane.b32.xlu1 %v1397_v13, %s2261_s23  ;;  %1284 = vrot.lane.b32.xlu0 %v1279_v57, %s2260_s8  ;;  %v1512_v44 = vadd.f32 %v1510_v42, %v1498_v12  ;;  %v1610_v45 = vadd.f32 %v1608_v30, %v1596_v55  ;;  %v768_v57 = vand.u32 127, %v354_v0 }
 0x5c1   : > { %v1635_v27 = vrot.slane %v1634_v31, 1  ;;  %v1621_v1 = vrot.slane %v1620_v60, 1 }
 0x5c2   : > { %v1527_v20 = vrot.slane %v1512_v44, %v3072_v14  ;;  %v1523_v21 = vrot.slane %v1512_v44, %v3075_v51  ;;  %v1531_v33 = vrot.slane %v1512_v44, %v3086_v39  ;;  %v769_v30 = vadd.s32 128, %v768_v57 }
 0x5c3   : > { %v1622_v56 = vsel %vm877_vm1, %v1620_v60, %v1621_v1  ;;  %v1636_v41 = vsel %vm892_vm2, %v1634_v31, %v1635_v27  ;;  %v3173_v31 = vand.u32 15, %v768_v57 }
 0x5c4   : > { %v1624_v47 = vadd.f32 %v1622_v56, %v1610_v45  ;;  %1410 = vrot.lane.b32.xlu1 %v1405_v25, %s2261_s23  ;;  %v830_v48 = vpop.permute.xlu1 %829  ;;  %1408 = vrot.lane.b32.xlu0 %v1401_v3, %s2261_s23  ;;  %v815_v2 = vpop.permute.xlu0 %814  ;;  %v3175_v60 = vand.u32 15, %v769_v30 }
 0x5c5   : > { %v831_v52 = vrot.slane %v830_v48, 1  ;;  %v816_v8 = vrot.slane %v815_v2, 1  ;;  %vm1009_vm5 = vcmp.ge.s32.totalorder %v3173_v31, 2  ;;  %vm896_vm7 = vcmp.ge.s32.totalorder %v3173_v31, 3 }
 0x5c6   : > { %v1638_v4 = vadd.f32 %v1636_v41, %v1624_v47  ;;  %vm1010_vm6 = vcmp.ge.s32.totalorder %v3175_v60, 2  ;;  %vm897_vm9 = vcmp.ge.s32.totalorder %v3175_v60, 3  ;;  %vm1135_vm10 = vcmp.ge.s32.totalorder %v3173_v31, 1 }
 0x5c7   : > { %v818_v63 = vsel %vm817_vm12, %v815_v2, %v816_v8  ;;  %v833_v38 = vsel %vm832_vm13, %v830_v48, %v831_v52  ;;  %vm1136_vm11 = vcmp.ge.s32.totalorder %v3175_v60, 1  ;;  %vm1412_vm12 = vcmask 1014784  }
 0x5c8   : > { %v820_v28 = vadd.f32 %v818_v63, %v802_v34  ;;  %1534 = vrot.lane.b32.xlu1 %v1527_v20, %s2262_s24  ;;  %v860_v19 = vpop.permute.xlu1 %859  ;;  %1532 = vrot.lane.b32.xlu0 %v1523_v21, %s2262_s24  ;;  %v845_v37 = vpop.permute.xlu0 %844  ;;  %v1649_v32 = vrot.slane %v1638_v4, %v3075_v51  ;;  %v1657_v5 = vrot.slane %v1638_v4, %v3086_v39  ;;  %vm1286_vm13 = vcmask 1022976  }
 0x5c9   : > { %v861_v46 = vrot.slane %v860_v19, 1  ;;  %v846_v40 = vrot.slane %v845_v37, 1  ;;  %v1653_v24 = vrot.slane %v1638_v4, %v3072_v14 }
 0x5ca   : > { %v835_v50 = vadd.f32 %v833_v38, %v820_v28 }
 0x5cb   : > { %v848_v15 = vsel %vm847_vm14, %v845_v37, %v846_v40  ;;  %v863_v17 = vsel %vm862_vm15, %v860_v19, %v861_v46  ;;  %vm1389_vm14 = vcmp.le.s32.totalorder %v3173_v31, 14  ;;  %vm1390_vm15 = vcmp.le.s32.totalorder %v3175_v60, 14 }
 0x5cc   : > { %v850_v16 = vadd.f32 %v848_v15, %v835_v50  ;;  %1658 = vrot.lane.b32.xlu1 %v1649_v32, %s2263_s25  ;;  %v890_v49 = vpop.permute.xlu1 %889  ;;  %1536 = vrot.lane.b32.xlu0 %v1531_v33, %s2262_s24  ;;  %v875_v59 = vpop.permute.xlu0 %874 }
 0x5cd   : > { %v891_v18 = vrot.slane %v890_v49, 1  ;;  %v876_v53 = vrot.slane %v875_v59, 1 }
 0x5ce   : > { %v865_v62 = vadd.f32 %v863_v17, %v850_v16 }
 0x5cf   : > { %v878_v7 = vsel %vm877_vm1, %v875_v59, %v876_v53  ;;  %v893_v22 = vsel %vm892_vm2, %v890_v49, %v891_v18  ;;  %vm1538_vm1 = vcmask 1006592   ;;  %vm1515_vm2 = vcmp.le.s32.totalorder %v3173_v31, 13 }
 0x5d0   : > { %v880_v9 = vadd.f32 %v878_v7, %v865_v62  ;;  %1662 = vrot.lane.b32.xlu1 %v1657_v5, %s2263_s25  ;;  %1660 = vrot.lane.b32.xlu0 %v1653_v24, %s2263_s25  ;;  %v1674_v7 = vstv %s3189_s27 }
 0x5d2   : > { %v895_v26 = vadd.f32 %v893_v22, %v880_v9 }
 0x5d4   : > { %1722 = vperm.xlu0 %2128, %v1719_v10   ;;  %v910_v61 = vrot.slane %v895_v26, %v3072_v14  ;;  %v906_v0 = vrot.slane %v895_v26, %v3075_v51 }
 0x5d6   : > { %v913_v56 = vsel %vm896_vm7, %v906_v0, 0.0  ;;  %v914_v47 = vsel %vm897_vm9, %v910_v61, 0.0 }
 0x612   : > { %v1031_v11 = vpop.permute.xlu1 %1030  ;;  %v1029_v29 = vpop.permute.xlu0 %1028 }
 0x613   : > { %v1035_v14 = vsel %vm1034_vm3, %v1029_v29, %v1031_v11 }
 0x614   : > { %v1039_v25 = vsel %vm1009_vm5, %v1035_v14, 0.0  ;;  %vm1641_vm5 = vcmp.le.s32.totalorder %v3173_v31, 12 }
 0x615   : > { %v1041_v52 = vadd.f32 %v1039_v25, %v913_v56  ;;  %v1718_v56 = vld [vmem:[%s3316_s18] sm:$0xf] }
 0x616   : > { %v1033_v13 = vpop.permute.xlu0 %1032 }
 0x617   : > { %v1036_v35 = vsel %vm1034_vm3, %v1031_v11, %v1033_v13  ;;  %vm1516_vm3 = vcmp.le.s32.totalorder %v3175_v60, 13 }
 0x618   : > { %v1040_v3 = vsel %vm1010_vm6, %v1036_v35, 0.0  ;;  %vm1642_vm6 = vcmp.le.s32.totalorder %v3175_v60, 12 }
 0x619   : > { %v1042_v8 = vadd.f32 %v1040_v3, %v914_v47 }
 0x61e   : > { %v1155_v39 = vpop.permute.xlu1 %1154  ;;  %v1157_v23 = vpop.permute.xlu0 %1156 }
 0x61f   : > { %v1161_v44 = vsel %vm1160_vm4, %v1155_v39, %v1157_v23 }
 0x620   : > { %v1165_v48 = vsel %vm1135_vm10, %v1161_v44, 0.0 }
 0x621   : > { %v1167_v63 = vadd.f32 %v1165_v48, %v1041_v52 }
 0x622   : > { %v1159_v42 = vpop.permute.xlu1 %1158 }
 0x623   : > { %v1162_v45 = vsel %vm1160_vm4, %v1157_v23, %v1159_v42  ;;  %vm1664_vm4 = vcmask 998400  }
 0x624   : > { %v1166_v54 = vsel %vm1136_vm11, %v1162_v45, 0.0 }
 0x625   : > { %v1168_v28 = vadd.f32 %v1166_v54, %v1042_v8 }
 0x62e   : > { %v1283_v55 = vpop.permute.xlu1 %1282  ;;  %v1281_v12 = vpop.permute.xlu0 %1280 }
 0x62f   : > { %v1287_v20 = vsel %vm1286_vm13, %v1281_v12, %v1283_v55 }
 0x630   : > { %v1293_v50 = vadd.f32 %v1287_v20, %v1167_v63 }
 0x632   : > { %v1407_v27 = vpop.permute.xlu1 %1406  ;;  %v1285_v1 = vpop.permute.xlu0 %1284 }
 0x633   : > { %v1288_v21 = vsel %vm1286_vm13, %v1283_v55, %v1285_v1 }
 0x634   : > { %v1294_v32 = vadd.f32 %v1288_v21, %v1168_v28 }
 0x636   : > { %v1411_v36 = vpop.permute.xlu1 %1410  ;;  %v1409_v43 = vpop.permute.xlu0 %1408 }
 0x637   : > { %v1413_v4 = vsel %vm1412_vm12, %v1407_v27, %v1409_v43  ;;  %v1414_v34 = vsel %vm1412_vm12, %v1409_v43, %v1411_v36  ;;  %v2158_v43 = vld [vmem:[%s3315_s28] sm:$0xf] }
 0x638   : > { %v1417_v37 = vsel %vm1389_vm14, %v1413_v4, 0.0  ;;  %v1418_v38 = vsel %vm1390_vm15, %v1414_v34, 0.0 }
 0x639   : > { %v1419_v49 = vadd.f32 %v1417_v37, %v1293_v50  ;;  %v1420_v59 = vadd.f32 %v1418_v38, %v1294_v32 }
 0x63a   : > { %v1535_v2 = vpop.permute.xlu1 %1534  ;;  %v1533_v41 = vpop.permute.xlu0 %1532 }
 0x63b   : > { %v1539_v19 = vsel %vm1538_vm1, %v1533_v41, %v1535_v2 }
 0x63c   : > { %v1543_v15 = vsel %vm1515_vm2, %v1539_v19, 0.0 }
 0x63d   : > { %v1545_v53 = vadd.f32 %v1543_v15, %v1419_v49 }
 0x63e   : > { %v1659_v46 = vpop.permute.xlu1 %1658  ;;  %v1537_v40 = vpop.permute.xlu0 %1536 }
 0x63f   : > { %v1540_v33 = vsel %vm1538_vm1, %v1535_v2, %v1537_v40 }
 0x640   : > { %v1544_v16 = vsel %vm1516_vm3, %v1540_v33, 0.0 }
 0x641   : > { %v1546_v62 = vadd.f32 %v1544_v16, %v1420_v59 }
 0x642   : > { %v1663_v17 = vpop.permute.xlu1 %1662  ;;  %v1661_v18 = vpop.permute.xlu0 %1660 }
 0x643   : > { %v1665_v5 = vsel %vm1664_vm4, %v1659_v46, %v1661_v18  ;;  %v1666_v24 = vsel %vm1664_vm4, %v1661_v18, %v1663_v17 }
 0x644   : > { %v1669_v9 = vsel %vm1641_vm5, %v1665_v5, 0.0  ;;  %v1670_v22 = vsel %vm1642_vm6, %v1666_v24, 0.0 }
 0x645   : > { %v1671_v10 = vadd.f32 %v1669_v9, %v1545_v53  ;;  %v1672_v26 = vadd.f32 %v1670_v22, %v1546_v62 }
 0x647   : > { %v1675_v61 = vadd.f32 %v1674_v7, %v1671_v10  ;;  %v1676_v11 = vadd.f32 %v1674_v7, %v1672_v26 }
 0x649   : > { %v2001_v29 = vmul.f32 -1.442695, %v1675_v61  ;;  %v2002_v39 = vmul.f32 -1.442695, %v1676_v11 }
 0x64b   : > { %2142 = vpow2.f32 %v2001_v29 }
 0x64c   : > { %2144 = vpow2.f32 %v2002_v39 }
 0x655   : > { %v2143_v13 = vpop.eup %2142 }
 0x656   : > { %v2145_v57 = vpop.eup %2144  ;;  %v1683_v23 = vadd.f32 1.0, %v2143_v13 }
 0x657   : > { %v1684_v42 = vadd.f32 1.0, %v2145_v57 }
 0x658   : > { %2146 = vrcp.f32 %v1683_v23 }
 0x659   : > { %2148 = vrcp.f32 %v1684_v42 }
 0x662   : > { %v2147_v30 = vpop.eup %2146 }
 0x663   : > { %v2149_v55 = vpop.eup %2148  ;;  %v1689_v12 = vpack.c.bf16 %v2147_v30, %v2147_v30 }
 0x664   : > { %v1690_v31 = vpack.c.bf16 %v2149_v55, %v2149_v55 }
 0x665   : > { %v1692_v60 = vpack.i.b16 %v1689_v12, %v1689_v12 }
 0x666   : > { %v1699_v27 = vpack.i.b16 %v1690_v31, %v1690_v31 }
 0x667   : > { %v1697_v1 = vrot.slane %v1692_v60, %v3075_v51 }
 0x668   : > { %v1704_v14 = vrot.slane %v1699_v27, %v3075_v51  ;;  %v1723_v51 = vpop.permute.xlu0 %1722 }
 0x66a   : > { %v1707_v35 = vcombine.low %v1697_v1, %v1704_v14 }
 0x66c   : > { %v1714_v0 = vrot.slane %v1707_v35, %v2398_v6 }
 0x66e   : > { %v1716_v36 = vmul.bf16 %v1714_v0, %v2452_v58 }
 0x670   : > { %v1717_v44 = vadd.bf16 %v2158_v43, %v1716_v36 }
 0x672   : > { %v1732_v45 = vrot.slane %v1717_v44, %v2398_v6 }
 0x674   : > { %v1733_v25 = vcombine.high %v1732_v45, %v1732_v45  ;;  %v1738_v3 = vsel %vm627_vm8, %v1732_v45, 0 }
 0x676   : > { %2003 = vmatprep.subr.msk.bf16.mxu1 %vm627_vm8, %v1733_v25 }
 0x677   : > { %1744 = vmatpush1.bf16.msra.mxu1 %v1738_v3 }
 0x67a   : > { %2004 = vmatmul.mubr.msk.bf16.vlgmr.msra.gmra.mrb[8].mxu1 %vm416_vm0, %v1718_v56 }
 0x74d   : > { %v1777_v47 = vpop.f32.mrb[8].mxu1 }
 0x74e   : > { %v1778_v58 = vadd.f32 %v1777_v47, %v1723_v51  ;;  %v1779_v48 = vpop.f32.mrb[9].mxu1 }
 0x74f   : > { %v1780_v54 = vadd.f32 %v1779_v48, %v1723_v51  ;;  %v1781_v6 = vpop.f32.mrb[10].mxu1 }
 0x750   : > { %v2005_v2 = vmul.f32 -1.442695, %v1778_v58  ;;  %v1782_v41 = vpop.f32.mrb[11].mxu1 }
 0x751   : > { %v2006_v52 = vmul.f32 -1.442695, %v1780_v54 }
 0x752   : > { %2150 = vpow2.f32 %v2005_v2 }
 0x753   : > { %2152 = vpow2.f32 %v2006_v52 }
 0x75c   : > { %v2151_v8 = vpop.eup %2150 }
 0x75d   : > { %v2153_v4 = vpop.eup %2152  ;;  %v1790_v34 = vadd.f32 1.0, %v2151_v8 }
 0x75e   : > { %v1791_v20 = vadd.f32 1.0, %v2153_v4 }
 0x75f   : > { %2154 = vrcp.f32 %v1790_v34 }
 0x760   : > { %2156 = vrcp.f32 %v1791_v20 }
 0x769   : > { %v2155_v21 = vpop.eup %2154 }
 0x76a   : > { %v2157_v63 = vpop.eup %2156  ;;  %v1796_v28 = vmul.f32 %v2155_v21, %v1778_v58 }
 0x76b   : > { %v1797_v19 = vmul.f32 %v2157_v63, %v1780_v54 }
 0x76c   : > { %1798 = vst [vmem:[%s340_s2] sm:$0xff] %v1796_v28 }
 0x76d   : > { %1799 = vst [vmem:[%s340_s2 + $0x8] sm:$0xff] %v1797_v19 }
 0x76e   : > { %2187 = shalt.err (!%p2184_p2)
}
 0x76f   : > { %s2188_s1 = scalar_lea.hbm %s3218_s13, 256  ;;  %s2192_s24 = scalar_lea.hbm %s3321_s16, 512 }
 0x770   : > { %p2189_p3 = scmp.ne.s32.totalorder %s3218_s13, %s2188_s1  ;;  %p2193_p8 = scmp.lt.u32.totalorder %s3218_s13, %s3321_s16 }
 0x771   : > { %p2194_p11 = scmp.lt.u32.totalorder %s2192_s24, %s2188_s1  ;;  %p2196_p10 = scmp.lt.u32.totalorder %s2188_s1, %s3218_s13 }
 0x772   : > { %p2190_p4 = pnand %p2189_p3, %p2356_p5 }
 0x773   : > { %p2195_p9 = por %p2194_p11, %p2193_p8 }
 0x774   : > { %p2191_p7 = pneg %p2190_p4 }
 0x775   : > { %p2197_p12 = por %p2196_p10, %p2195_p9 }
 0x777   : > { %p2198_p13 = pnand %p2197_p12, %p2191_p7 }
 0x779   : > { %2201 = shalt.err (!%p2198_p13)
}
 0x77a   : > { %2061 = dma.vmem_to_hbm [thread:$0]  (%p2356_p5), %s3220_s3, 256, %s3218_s13, %s1801_s14  }
 0x77b PF: > { %s3322_s21 = sld [smem:[#allocation14_spill]]  ;;  %s3323_s26 = sld [smem:[#allocation11_spill]] }
 0x781   : > { %p2073_p0 = scmp.ge.s32.totalorder %s3322_s21, 2  ;;  %s1827_s28 = sand.u32 1, %s3323_s26  }
 0x782   : > { %s1828_s10 = scalar_lea.sflag [#allocation6], %s1827_s28 }
 0x783   : > { %p2068_p1 = pnand %p2073_p0, %p2360_p6 }
 0x785   : > { %2223 = dma.done.wait (!%p2068_p1), %s1828_s10, 256  }
 0x786   : > { %2225 = vsyncadd (!%p2068_p1), %s1828_s10, 4294967040  ;;  %s3325_s14 = sld [smem:[#allocation16_spill]]  ;;  %s3326_s11 = sld [smem:[#allocation12_spill]] }
 0x787   : > { %s3327_s12 = sld [smem:[#allocation13_spill]]  ;;  %s3328_s13 = sld [smem:[#allocation17_spill]] }
 0x78c   : > { %p21_p2 = scmp.ge.s32.totalorder %s3325_s14, 4  }
 0x78e   :  { %23 = sbr.rel (!%p21_p2) target bundleno = 15 (0xf), region = 96 }
 0x795   :  { %1833 = vsyncpa [#allocation6], 1 }
 0x796   :  { %1835 = vsyncpa [#allocation6 + $0x1], 1 }
 0x797   :  { %1836 = vsyncpa [#allocation7], 1 }
 0x798   :  { %1838 = vsyncpa [#allocation7 + $0x1], 1 }

</bundles_post_ra>
